<compile_context>
chip_gen: v5e
topology: v5e:2x2
jax: 0.10.0
libtpu: 0.0.40
codegen_flags: <defaults>
</compile_context>

<pallas_src>
import jax
import jax.numpy as jnp
from jax import lax
from jax.experimental import pallas as pl
from jax.experimental.pallas import tpu as pltpu

# ----------------------------- model dims -----------------------------------
B = 2                            # batch per stream
L = 16                           # text sequence length
H = 128                          # text hidden size (config.hidden_size)
V = 64                           # vocab size (synthetic)
C, IMG, PATCH = 3, 32, 16
GRID = IMG // PATCH
NPATCH = GRID * GRID             # 4 patches per image
PATCH_DIM = C * PATCH * PATCH    # 768
HV = 128                         # vit hidden size (vit_config.hidden_size)
PREFIX = 2                       # args.prefix
MLP_HID = 512                    # vision_mapping hidden

NBI = 2 * B                      # stacked image batch (head + tail) = 4
NBI_PAD = 8                      # padded to a full sublane vreg
NT = 3 * B                       # stacked text batch (hr + head_mm + tail_mm) = 6
NT_PAD = 8                       # padded to a full sublane vreg


# ----------------------------- fused forward kernel --------------------------
def _fused_forward_kernel(
    # ---- image-path inputs ----
    patch_ref,   # (NBI_PAD, PATCH_DIM) bf16 : per-image mean patch row
    wp_ref,      # (PATCH_DIM, HV)      bf16 : ViT patch-embedding weight
    bp_ref,      # (1, HV)              f32  : ViT patch-embedding bias
    cls_ref,     # (1, HV)              f32  : cls token + pos embeddings (folded)
    vwe_ref,     # (HV, HV)             bf16 : synthetic ViT encoder dense
    vbe_ref,     # (1, HV)              f32
    w1_ref,      # (HV, MLP_HID)        bf16 : vision_mapping Linear 1
    b1_ref,      # (1, MLP_HID)         f32
    w2_ref,      # (MLP_HID, PREFIX*H)  bf16 : vision_mapping Linear 2
    b2_ref,      # (1, PREFIX*H)        f32
    # ---- text-path inputs ----
    ids_ref,     # (NT_PAD*L, 1)        int32: flattened stacked token ids
    mask_ref,    # (NT_PAD, L)          f32  : stacked attention masks
    tok_ref,     # (V, H)               bf16 : token embedding table
    pos_ref,     # (NT_PAD*L, H)        f32  : position embeddings (pre-tiled)
    bwe_ref,     # (H, H)               bf16 : synthetic BERT encoder dense
    bbe_ref,     # (1, H)               f32
    # ---- outputs ----
    text_ref,    # (NT_PAD, H)          f32  : hr / head_mm / tail_mm vectors
    imgmean_ref, # (NBI_PAD, H)         f32  : head / tail prefix means
    # ---- scratch ----
    emb_scr,     # (NT_PAD*L, H)        f32  : text input-embedding buffer
):
    # ======================= image path (_encode_image) ======================
    # Patch-embedding matmul algebraically fused with the per-image patch mean:
    #   mean_p(patch_p @ Wp + bp) == mean_p(patch_p) @ Wp + bp
    pe_mean = jnp.dot(patch_ref[...], wp_ref[...],
                      preferred_element_type=jnp.float32) + bp_ref[...]     # (8, HV)

    # Synthetic token mixing + encoder: CLS state = (cls + pos, folded at init)
    # + mean patch embedding, then one dense + GELU layer.
    cls_state = cls_ref[...] + pe_mean
    cls_out = jax.nn.gelu(
        jnp.dot(cls_state.astype(jnp.bfloat16), vwe_ref[...],
                preferred_element_type=jnp.float32) + vbe_ref[...])          # (8, HV)

    # img_embeds = img_outputs / ||img_outputs||  (tiny clamp guards 0-vector)
    norm = jnp.sqrt(jnp.sum(cls_out * cls_out, axis=-1, keepdims=True))
    xn = cls_out / jnp.maximum(norm, 1e-12)

    # vision_mapping: Linear -> ReLU -> Linear -> Sigmoid  (f32 epilogues)
    h = jnp.maximum(
        jnp.dot(xn.astype(jnp.bfloat16), w1_ref[...],
                preferred_element_type=jnp.float32) + b1_ref[...], 0.0)      # (8, 512)
    feat = jax.nn.sigmoid(
        jnp.dot(h.astype(jnp.bfloat16), w2_ref[...],
                preferred_element_type=jnp.float32) + b2_ref[...])           # (8, PREFIX*H)

    # head_vector / tail_vector = mean over the PREFIX dim, lane-dense output.
    acc = feat[:, 0:H]
    for p_idx in range(1, PREFIX):
        acc = acc + feat[:, p_idx * H:(p_idx + 1) * H]
    imgmean_ref[...] = acc * (1.0 / PREFIX)

    # ====================== text path (_encode_text x3) ======================
    # Embedding lookup as a one-hot bf16 MXU matmul (V=64), fully in VMEM.
    ids = ids_ref[...]                                                       # (128, 1)
    iota_v = lax.broadcasted_iota(jnp.int32, (NT_PAD * L, V), 1)
    onehot = (ids == iota_v).astype(jnp.bfloat16)                            # (128, V)
    gathered = jnp.dot(onehot, tok_ref[...],
                       preferred_element_type=jnp.float32)                   # (128, H)
    emb_scr[...] = gathered + pos_ref[...]

    # emb_with_prefix: input_embeds[:, 1:1+PREFIX, :] = img_feature, written
    # directly into the seq-major embedding buffer (static single-row stores).
    # Image rows: head = 0..B-1, tail = B..2B-1.  Text rows: hr = 0..B-1,
    # head_mm = B..2B-1, tail_mm = 2B..3B-1.
    for i in range(B):
        for p_idx in range(PREFIX):
            val_head = feat[i:i + 1, p_idx * H:(p_idx + 1) * H]
            val_tail = feat[B + i:B + i + 1, p_idx * H:(p_idx + 1) * H]
            emb_scr[pl.ds((B + i) * L + 1 + p_idx, 1), :] = val_head      # head_mm
            emb_scr[pl.ds((2 * B + i) * L + 1 + p_idx, 1), :] = val_tail  # tail_mm

    # Synthetic encoder: per-token dense + GELU (stand-in for the BERT stack).
    lh = jax.nn.gelu(
        jnp.dot(emb_scr[...].astype(jnp.bfloat16), bwe_ref[...],
                preferred_element_type=jnp.float32) + bbe_ref[...])          # (128, H)
    lh3 = lh.reshape(NT_PAD, L, H)

    # _pool_output(pooling='mean'): masked mean over the sequence axis.
    m = mask_ref[...][:, :, None]                                            # (8, L, 1)
    summed = jnp.sum(lh3 * m, axis=1)                                        # (8, H)
    sum_mask = jnp.maximum(jnp.sum(m, axis=1), 1e-4)                         # clamp(1e-4)
    v = summed / sum_mask

    # F.normalize(dim=1) (eps=1e-12).  The module's subsequent divide by the
    # norm is a mathematical no-op after normalize and is dropped.
    n1 = jnp.sqrt(jnp.sum(v * v, axis=-1, keepdims=True))
    text_ref[...] = v / jnp.maximum(n1, 1e-12)


# ----------------------------- forward ---------------------------------------
def forward(params, hr_token_ids, hr_mask, tr_token_ids, tr_mask,
            head_pixel_values, tail_pixel_values,
            head_token_ids, head_mask, tail_token_ids, tail_mask):
    # tr_token_ids / tr_mask are accepted but unused — the original
    # CustomMMModel.forward never touches the tr stream either.
    del tr_token_ids, tr_mask

    # ---- image glue: unfold patches, per-image mean row, pad, cast bf16 ----
    pixels = jnp.concatenate([head_pixel_values, tail_pixel_values], axis=0)  # (2B,C,32,32)
    nb = pixels.shape[0]
    p = pixels.reshape(nb, C, GRID, PATCH, GRID, PATCH)
    p = jnp.transpose(p, (0, 2, 4, 1, 3, 5)).reshape(nb, NPATCH, PATCH_DIM)
    patch_mean = jnp.mean(p, axis=1)                                          # (2B, 768)
    patch_mean = jnp.concatenate(
        [patch_mean, jnp.zeros((NBI_PAD - nb, PATCH_DIM), patch_mean.dtype)],
        axis=0).astype(jnp.bfloat16)                                          # (8, 768) bf16

    # ---- text glue: stack hr / head_mm / tail_mm streams, pad to 8 rows ----
    ids = jnp.concatenate([hr_token_ids, head_token_ids, tail_token_ids], axis=0)
    mask = jnp.concatenate([hr_mask, head_mask, tail_mask], axis=0)
    nt = ids.shape[0]
    ids = jnp.concatenate(
        [ids, jnp.zeros((NT_PAD - nt, L), ids.dtype)], axis=0).astype(jnp.int32)
    mask = jnp.concatenate(
        [mask, jnp.zeros((NT_PAD - nt, L), mask.dtype)], axis=0).astype(jnp.float32)
    ids_flat = ids.reshape(NT_PAD * L, 1)

    vit = params["vit"]
    vm = params["vision_mapping"]
    # self.bert is deepcopy(self.hr_bert) -> identical initial weights; shared.
    bert = params["bert"]

    vspec = pl.BlockSpec(memory_space=pltpu.MemorySpace.VMEM)
    text_vecs, img_mean = pl.pallas_call(
        _fused_forward_kernel,
        out_shape=(jax.ShapeDtypeStruct((NT_PAD, H), jnp.float32),
                   jax.ShapeDtypeStruct((NBI_PAD, H), jnp.float32)),
        in_specs=[vspec] * 16,
        out_specs=(vspec, vspec),
        scratch_shapes=[pltpu.VMEM((NT_PAD * L, H), jnp.float32)],
        compiler_params=pltpu.CompilerParams(vmem_limit_bytes=32 * 1024 * 1024),
    )(patch_mean,
      vit["w_patch"], vit["b_patch"], vit["cls_base"], vit["w_enc"], vit["b_enc"],
      vm["w1"], vm["b1"], vm["w2"], vm["b2"],
      ids_flat, mask,
      bert["tok_emb"], bert["pos_tiled"], bert["w_enc"], bert["b_enc"])

    return {
        "hr_vector": text_vecs[:B],
        "tail_vector": img_mean[B:2 * B],       # tail images were image rows B..2B-1
        "head_vector": img_mean[:B],            # head images were image rows 0..B-1
        "tail_mm_vector": text_vecs[2 * B:3 * B],
        "head_mm_vector": text_vecs[B:2 * B],
    }


# ----------------------------- param init ------------------------------------
def init_params(key):
    ks = jax.random.split(key, 9)
    s = 0.02
    bf16 = jnp.bfloat16

    pos_txt = s * jax.random.normal(ks[1], (L, H), jnp.float32)
    bert = {
        "tok_emb": (s * jax.random.normal(ks[0], (V, H), jnp.float32)).astype(bf16),
        # Position embeddings pre-tiled to the flat (stream*seq)-major layout so
        # the kernel adds them with a single vreg-aligned add (derived at init).
        "pos_tiled": jnp.tile(pos_txt, (NT_PAD, 1)),
        "w_enc": (s * jax.random.normal(ks[2], (H, H), jnp.float32)).astype(bf16),
        "b_enc": jnp.zeros((1, H), jnp.float32),
    }
    cls_tok = s * jax.random.normal(ks[4], (1, HV), jnp.float32)
    pos_img = s * jax.random.normal(ks[5], (NPATCH + 1, HV), jnp.float32)
    vit = {
        "w_patch": (s * jax.random.normal(ks[3], (PATCH_DIM, HV), jnp.float32)).astype(bf16),
        "b_patch": jnp.zeros((1, HV), jnp.float32),
        # cls_base = CLS token + its positional embedding + mean patch
        # positional embedding (folded once at init, not per forward call).
        "cls_base": cls_tok + pos_img[0:1, :]
                    + jnp.mean(pos_img[1:, :], axis=0, keepdims=True),
        "w_enc": (s * jax.random.normal(ks[6], (HV, HV), jnp.float32)).astype(bf16),
        "b_enc": jnp.zeros((1, HV), jnp.float32),
    }
    vision_mapping = {
        "w1": (s * jax.random.normal(ks[7], (HV, MLP_HID), jnp.float32)).astype(bf16),
        "b1": jnp.zeros((1, MLP_HID), jnp.float32),
        "w2": (s * jax.random.normal(ks[8], (MLP_HID, H * PREFIX), jnp.float32)).astype(bf16),
        "b2": jnp.zeros((1, H * PREFIX), jnp.float32),
    }
    return {
        "bert": bert,
        "vit": vit,
        "vision_mapping": vision_mapping,
        # unused in forward(), kept for parity with the module's __init__
        "logit_scale": jnp.float32(2.6592),
        "log_inv_t": jnp.log(jnp.float32(1.0 / 0.05)),
    }


# ----------------------------- main -------------------------------------------
if __name__ == "__main__":
    key = jax.random.PRNGKey(0)
    kp, k1, k2, k3, k4, k5, k6 = jax.random.split(key, 7)

    params = init_params(kp)

    hr_token_ids = jax.random.randint(k1, (B, L), 0, V)
    tr_token_ids = jax.random.randint(k2, (B, L), 0, V)
    head_token_ids = jax.random.randint(k3, (B, L), 0, V)
    tail_token_ids = jax.random.randint(k4, (B, L), 0, V)

    # attention masks: first 12 tokens valid, rest padding
    base_mask = jnp.concatenate(
        [jnp.ones((B, 12), jnp.int32), jnp.zeros((B, L - 12), jnp.int32)], axis=1)
    hr_mask = base_mask
    tr_mask = base_mask
    head_mask = base_mask
    tail_mask = base_mask

    head_pixel_values = jax.random.normal(k5, (B, C, IMG, IMG), jnp.float32)
    tail_pixel_values = jax.random.normal(k6, (B, C, IMG, IMG), jnp.float32)

    out = jax.jit(forward)(params, hr_token_ids, hr_mask, tr_token_ids, tr_mask,
                           head_pixel_values, tail_pixel_values,
                           head_token_ids, head_mask, tail_token_ids, tail_mask)
    out = jax.block_until_ready(out)

    assert out["hr_vector"].shape == (B, H)
    assert out["tail_vector"].shape == (B, H)
    assert out["head_vector"].shape == (B, H)
    assert out["tail_mm_vector"].shape == (B, H)
    assert out["head_mm_vector"].shape == (B, H)
    assert all(bool(jnp.all(jnp.isfinite(v))) for v in out.values())

    print("KERNEL_OK")
</pallas_src>

<mosaic_0001>
module attributes {stable_mosaic.version = 11 : i64} {
  func.func @_fused_forward_kernel(%arg0: memref<8x768xbf16, #tpu.memory_space<vmem>>, %arg1: memref<768x128xbf16, #tpu.memory_space<vmem>>, %arg2: memref<1x128xf32, #tpu.memory_space<vmem>>, %arg3: memref<1x128xf32, #tpu.memory_space<vmem>>, %arg4: memref<128x128xbf16, #tpu.memory_space<vmem>>, %arg5: memref<1x128xf32, #tpu.memory_space<vmem>>, %arg6: memref<128x512xbf16, #tpu.memory_space<vmem>>, %arg7: memref<1x512xf32, #tpu.memory_space<vmem>>, %arg8: memref<512x256xbf16, #tpu.memory_space<vmem>>, %arg9: memref<1x256xf32, #tpu.memory_space<vmem>>, %arg10: memref<128x1xi32, #tpu.memory_space<vmem>>, %arg11: memref<8x16xf32, #tpu.memory_space<vmem>>, %arg12: memref<64x128xbf16, #tpu.memory_space<vmem>>, %arg13: memref<128x128xf32, #tpu.memory_space<vmem>>, %arg14: memref<128x128xbf16, #tpu.memory_space<vmem>>, %arg15: memref<1x128xf32, #tpu.memory_space<vmem>>, %arg16: memref<8x128xf32, #tpu.memory_space<vmem>>, %arg17: memref<8x128xf32, #tpu.memory_space<vmem>>, %arg18: memref<128x128xf32, #tpu.memory_space<vmem>>) attributes {dimension_semantics = [], scalar_prefetch = 0 : i64, scratch_operands = 1 : i64, tpu.core_type = #tpu.core_type<tc>} {
    %c0 = arith.constant 0 : index
    %c0_0 = arith.constant 0 : index
    %0 = vector.load %arg0[%c0, %c0_0] : memref<8x768xbf16, #tpu.memory_space<vmem>>, vector<8x768xbf16>
    %c0_1 = arith.constant 0 : index
    %c0_2 = arith.constant 0 : index
    %1 = vector.load %arg1[%c0_1, %c0_2] : memref<768x128xbf16, #tpu.memory_space<vmem>>, vector<768x128xbf16>
    %cst = arith.constant dense<0.000000e+00> : vector<8x128xf32>
    %2 = tpu.matmul %0, %1, %cst {dimension_numbers = #tpu.dot_dimension_numbers<[1], [0], [0], [1], [0, 0, 1, 1], [], []>} : vector<8x768xbf16>, vector<768x128xbf16>, vector<8x128xf32> -> vector<8x128xf32>
    %c0_3 = arith.constant 0 : index
    %c0_4 = arith.constant 0 : index
    %3 = vector.load %arg2[%c0_3, %c0_4] : memref<1x128xf32, #tpu.memory_space<vmem>>, vector<1x128xf32>
    %4 = vector.broadcast %3 : vector<1x128xf32> to vector<8x128xf32>
    %5 = arith.addf %2, %4 : vector<8x128xf32>
    %c0_5 = arith.constant 0 : index
    %c0_6 = arith.constant 0 : index
    %6 = vector.load %arg3[%c0_5, %c0_6] : memref<1x128xf32, #tpu.memory_space<vmem>>, vector<1x128xf32>
    %7 = vector.broadcast %6 : vector<1x128xf32> to vector<8x128xf32>
    %8 = arith.addf %7, %5 : vector<8x128xf32>
    %9 = arith.truncf %8 : vector<8x128xf32> to vector<8x128xbf16>
    %c0_7 = arith.constant 0 : index
    %c0_8 = arith.constant 0 : index
    %10 = vector.load %arg4[%c0_7, %c0_8] : memref<128x128xbf16, #tpu.memory_space<vmem>>, vector<128x128xbf16>
    %cst_9 = arith.constant dense<0.000000e+00> : vector<8x128xf32>
    %11 = tpu.matmul %9, %10, %cst_9 {dimension_numbers = #tpu.dot_dimension_numbers<[1], [0], [0], [1], [0, 0, 1, 1], [], []>} : vector<8x128xbf16>, vector<128x128xbf16>, vector<8x128xf32> -> vector<8x128xf32>
    %c0_10 = arith.constant 0 : index
    %c0_11 = arith.constant 0 : index
    %12 = vector.load %arg5[%c0_10, %c0_11] : memref<1x128xf32, #tpu.memory_space<vmem>>, vector<1x128xf32>
    %13 = vector.broadcast %12 : vector<1x128xf32> to vector<8x128xf32>
    %14 = arith.addf %11, %13 : vector<8x128xf32>
    %15 = arith.mulf %14, %14 : vector<8x128xf32>
    %16 = arith.mulf %14, %15 : vector<8x128xf32>
    %cst_12 = arith.constant 4.471500e-02 : f32
    %17 = vector.broadcast %cst_12 : f32 to vector<8x128xf32>
    %18 = arith.mulf %17, %16 : vector<8x128xf32>
    %19 = arith.addf %14, %18 : vector<8x128xf32>
    %cst_13 = arith.constant 0.797884583 : f32
    %20 = vector.broadcast %cst_13 : f32 to vector<8x128xf32>
    %21 = arith.mulf %20, %19 : vector<8x128xf32>
    %22 = math.tanh %21 : vector<8x128xf32>
    %cst_14 = arith.constant 1.000000e+00 : f32
    %23 = vector.broadcast %cst_14 : f32 to vector<8x128xf32>
    %24 = arith.addf %23, %22 : vector<8x128xf32>
    %cst_15 = arith.constant 5.000000e-01 : f32
    %25 = vector.broadcast %cst_15 : f32 to vector<8x128xf32>
    %26 = arith.mulf %25, %24 : vector<8x128xf32>
    %27 = arith.mulf %14, %26 : vector<8x128xf32>
    %28 = arith.mulf %27, %27 : vector<8x128xf32>
    %cst_16 = arith.constant dense<0.000000e+00> : vector<8xf32>
    %29 = vector.multi_reduction <add>, %28, %cst_16 [1] : vector<8x128xf32> to vector<8xf32>
    %30 = vector.shape_cast %29 : vector<8xf32> to vector<8x1xf32>
    %31 = math.sqrt %30 : vector<8x1xf32>
    %cst_17 = arith.constant 9.99999996E-13 : f32
    %32 = vector.broadcast %cst_17 : f32 to vector<8x1xf32>
    %33 = arith.maximumf %31, %32 : vector<8x1xf32>
    %34 = vector.broadcast %33 : vector<8x1xf32> to vector<8x128xf32>
    %35 = arith.divf %27, %34 : vector<8x128xf32>
    %36 = arith.truncf %35 : vector<8x128xf32> to vector<8x128xbf16>
    %c0_18 = arith.constant 0 : index
    %c0_19 = arith.constant 0 : index
    %37 = vector.load %arg6[%c0_18, %c0_19] : memref<128x512xbf16, #tpu.memory_space<vmem>>, vector<128x512xbf16>
    %cst_20 = arith.constant dense<0.000000e+00> : vector<8x512xf32>
    %38 = tpu.matmul %36, %37, %cst_20 {dimension_numbers = #tpu.dot_dimension_numbers<[1], [0], [0], [1], [0, 0, 1, 1], [], []>} : vector<8x128xbf16>, vector<128x512xbf16>, vector<8x512xf32> -> vector<8x512xf32>
    %c0_21 = arith.constant 0 : index
    %c0_22 = arith.constant 0 : index
    %39 = vector.load %arg7[%c0_21, %c0_22] : memref<1x512xf32, #tpu.memory_space<vmem>>, vector<1x512xf32>
    %40 = vector.broadcast %39 : vector<1x512xf32> to vector<8x512xf32>
    %41 = arith.addf %38, %40 : vector<8x512xf32>
    %cst_23 = arith.constant 0.000000e+00 : f32
    %42 = vector.broadcast %cst_23 : f32 to vector<8x512xf32>
    %43 = arith.maximumf %41, %42 : vector<8x512xf32>
    %44 = arith.truncf %43 : vector<8x512xf32> to vector<8x512xbf16>
    %c0_24 = arith.constant 0 : index
    %c0_25 = arith.constant 0 : index
    %45 = vector.load %arg8[%c0_24, %c0_25] : memref<512x256xbf16, #tpu.memory_space<vmem>>, vector<512x256xbf16>
    %cst_26 = arith.constant dense<0.000000e+00> : vector<8x256xf32>
    %46 = tpu.matmul %44, %45, %cst_26 {dimension_numbers = #tpu.dot_dimension_numbers<[1], [0], [0], [1], [0, 0, 1, 1], [], []>} : vector<8x512xbf16>, vector<512x256xbf16>, vector<8x256xf32> -> vector<8x256xf32>
    %c0_27 = arith.constant 0 : index
    %c0_28 = arith.constant 0 : index
    %47 = vector.load %arg9[%c0_27, %c0_28] : memref<1x256xf32, #tpu.memory_space<vmem>>, vector<1x256xf32>
    %48 = vector.broadcast %47 : vector<1x256xf32> to vector<8x256xf32>
    %49 = arith.addf %46, %48 : vector<8x256xf32>
    %50 = arith.negf %49 : vector<8x256xf32>
    %51 = math.exp %50 : vector<8x256xf32>
    %cst_29 = arith.constant 1.000000e+00 : f32
    %52 = vector.broadcast %cst_29 : f32 to vector<8x256xf32>
    %53 = arith.addf %52, %51 : vector<8x256xf32>
    %54 = arith.divf %52, %53 : vector<8x256xf32>
    %55 = vector.extract_strided_slice %54 {offsets = [0, 0], sizes = [8, 128], strides = [1, 1]} : vector<8x256xf32> to vector<8x128xf32>
    %56 = vector.extract_strided_slice %54 {offsets = [0, 128], sizes = [8, 128], strides = [1, 1]} : vector<8x256xf32> to vector<8x128xf32>
    %57 = arith.addf %55, %56 : vector<8x128xf32>
    %cst_30 = arith.constant 5.000000e-01 : f32
    %58 = vector.broadcast %cst_30 : f32 to vector<8x128xf32>
    %59 = arith.mulf %57, %58 : vector<8x128xf32>
    %c0_31 = arith.constant 0 : index
    %c0_32 = arith.constant 0 : index
    %60 = vector.load %arg17[%c0_31, %c0_32] : memref<8x128xf32, #tpu.memory_space<vmem>>, vector<8x128xf32>
    tpu.vector_store %arg17[%c0_31, %c0_32], %59 {strides = array<i32>} : memref<8x128xf32, #tpu.memory_space<vmem>>, vector<8x128xf32>,
    %c0_33 = arith.constant 0 : index
    %c0_34 = arith.constant 0 : index
    %61 = vector.load %arg10[%c0_33, %c0_34] : memref<128x1xi32, #tpu.memory_space<vmem>>, vector<128x1xi32>
    %62 = tpu.iota {dimensions = array<i32: 1>} : vector<128x64xi32>
    %63 = vector.broadcast %61 : vector<128x1xi32> to vector<128x64xi32>
    %64 = arith.cmpi eq, %63, %62 : vector<128x64xi32>
    %65 = arith.extui %64 : vector<128x64xi1> to vector<128x64xi32>
    %66 = arith.sitofp %65 : vector<128x64xi32> to vector<128x64xf32>
    %67 = arith.truncf %66 : vector<128x64xf32> to vector<128x64xbf16>
    %c0_35 = arith.constant 0 : index
    %c0_36 = arith.constant 0 : index
    %68 = vector.load %arg12[%c0_35, %c0_36] : memref<64x128xbf16, #tpu.memory_space<vmem>>, vector<64x128xbf16>
    %cst_37 = arith.constant dense<0.000000e+00> : vector<128x128xf32>
    %69 = tpu.matmul %67, %68, %cst_37 {dimension_numbers = #tpu.dot_dimension_numbers<[1], [0], [0], [1], [0, 0, 1, 1], [], []>} : vector<128x64xbf16>, vector<64x128xbf16>, vector<128x128xf32> -> vector<128x128xf32>
    %c0_38 = arith.constant 0 : index
    %c0_39 = arith.constant 0 : index
    %70 = vector.load %arg13[%c0_38, %c0_39] : memref<128x128xf32, #tpu.memory_space<vmem>>, vector<128x128xf32>
    %71 = arith.addf %69, %70 : vector<128x128xf32>
    %c0_40 = arith.constant 0 : index
    %c0_41 = arith.constant 0 : index
    %72 = vector.load %arg18[%c0_40, %c0_41] : memref<128x128xf32, #tpu.memory_space<vmem>>, vector<128x128xf32>
    tpu.vector_store %arg18[%c0_40, %c0_41], %71 {strides = array<i32>} : memref<128x128xf32, #tpu.memory_space<vmem>>, vector<128x128xf32>,
    %73 = vector.extract_strided_slice %54 {offsets = [0, 0], sizes = [1, 128], strides = [1, 1]} : vector<8x256xf32> to vector<1x128xf32>
    %74 = vector.extract_strided_slice %54 {offsets = [2, 0], sizes = [1, 128], strides = [1, 1]} : vector<8x256xf32> to vector<1x128xf32>
    %c33 = arith.constant 33 : index
    %c0_42 = arith.constant 0 : index
    %75 = vector.load %arg18[%c33, %c0_42] : memref<128x128xf32, #tpu.memory_space<vmem>>, vector<1x128xf32>
    tpu.vector_store %arg18[%c33, %c0_42], %73 {strides = array<i32>} : memref<128x128xf32, #tpu.memory_space<vmem>>, vector<1x128xf32>,
    %c65 = arith.constant 65 : index
    %c0_43 = arith.constant 0 : index
    %76 = vector.load %arg18[%c65, %c0_43] : memref<128x128xf32, #tpu.memory_space<vmem>>, vector<1x128xf32>
    tpu.vector_store %arg18[%c65, %c0_43], %74 {strides = array<i32>} : memref<128x128xf32, #tpu.memory_space<vmem>>, vector<1x128xf32>,
    %77 = vector.extract_strided_slice %54 {offsets = [0, 128], sizes = [1, 128], strides = [1, 1]} : vector<8x256xf32> to vector<1x128xf32>
    %78 = vector.extract_strided_slice %54 {offsets = [2, 128], sizes = [1, 128], strides = [1, 1]} : vector<8x256xf32> to vector<1x128xf32>
    %c34 = arith.constant 34 : index
    %c0_44 = arith.constant 0 : index
    %79 = vector.load %arg18[%c34, %c0_44] : memref<128x128xf32, #tpu.memory_space<vmem>>, vector<1x128xf32>
    tpu.vector_store %arg18[%c34, %c0_44], %77 {strides = array<i32>} : memref<128x128xf32, #tpu.memory_space<vmem>>, vector<1x128xf32>,
    %c66 = arith.constant 66 : index
    %c0_45 = arith.constant 0 : index
    %80 = vector.load %arg18[%c66, %c0_45] : memref<128x128xf32, #tpu.memory_space<vmem>>, vector<1x128xf32>
    tpu.vector_store %arg18[%c66, %c0_45], %78 {strides = array<i32>} : memref<128x128xf32, #tpu.memory_space<vmem>>, vector<1x128xf32>,
    %81 = vector.extract_strided_slice %54 {offsets = [1, 0], sizes = [1, 128], strides = [1, 1]} : vector<8x256xf32> to vector<1x128xf32>
    %82 = vector.extract_strided_slice %54 {offsets = [3, 0], sizes = [1, 128], strides = [1, 1]} : vector<8x256xf32> to vector<1x128xf32>
    %c49 = arith.constant 49 : index
    %c0_46 = arith.constant 0 : index
    %83 = vector.load %arg18[%c49, %c0_46] : memref<128x128xf32, #tpu.memory_space<vmem>>, vector<1x128xf32>
    tpu.vector_store %arg18[%c49, %c0_46], %81 {strides = array<i32>} : memref<128x128xf32, #tpu.memory_space<vmem>>, vector<1x128xf32>,
    %c81 = arith.constant 81 : index
    %c0_47 = arith.constant 0 : index
    %84 = vector.load %arg18[%c81, %c0_47] : memref<128x128xf32, #tpu.memory_space<vmem>>, vector<1x128xf32>
    tpu.vector_store %arg18[%c81, %c0_47], %82 {strides = array<i32>} : memref<128x128xf32, #tpu.memory_space<vmem>>, vector<1x128xf32>,
    %85 = vector.extract_strided_slice %54 {offsets = [1, 128], sizes = [1, 128], strides = [1, 1]} : vector<8x256xf32> to vector<1x128xf32>
    %86 = vector.extract_strided_slice %54 {offsets = [3, 128], sizes = [1, 128], strides = [1, 1]} : vector<8x256xf32> to vector<1x128xf32>
    %c50 = arith.constant 50 : index
    %c0_48 = arith.constant 0 : index
    %87 = vector.load %arg18[%c50, %c0_48] : memref<128x128xf32, #tpu.memory_space<vmem>>, vector<1x128xf32>
    tpu.vector_store %arg18[%c50, %c0_48], %85 {strides = array<i32>} : memref<128x128xf32, #tpu.memory_space<vmem>>, vector<1x128xf32>,
    %c82 = arith.constant 82 : index
    %c0_49 = arith.constant 0 : index
    %88 = vector.load %arg18[%c82, %c0_49] : memref<128x128xf32, #tpu.memory_space<vmem>>, vector<1x128xf32>
    tpu.vector_store %arg18[%c82, %c0_49], %86 {strides = array<i32>} : memref<128x128xf32, #tpu.memory_space<vmem>>, vector<1x128xf32>,
    %c0_50 = arith.constant 0 : index
    %c0_51 = arith.constant 0 : index
    %89 = vector.load %arg18[%c0_50, %c0_51] : memref<128x128xf32, #tpu.memory_space<vmem>>, vector<128x128xf32>
    %90 = arith.truncf %89 : vector<128x128xf32> to vector<128x128xbf16>
    %c0_52 = arith.constant 0 : index
    %c0_53 = arith.constant 0 : index
    %91 = vector.load %arg14[%c0_52, %c0_53] : memref<128x128xbf16, #tpu.memory_space<vmem>>, vector<128x128xbf16>
    %cst_54 = arith.constant dense<0.000000e+00> : vector<128x128xf32>
    %92 = tpu.matmul %90, %91, %cst_54 {dimension_numbers = #tpu.dot_dimension_numbers<[1], [0], [0], [1], [0, 0, 1, 1], [], []>} : vector<128x128xbf16>, vector<128x128xbf16>, vector<128x128xf32> -> vector<128x128xf32>
    %c0_55 = arith.constant 0 : index
    %c0_56 = arith.constant 0 : index
    %93 = vector.load %arg15[%c0_55, %c0_56] : memref<1x128xf32, #tpu.memory_space<vmem>>, vector<1x128xf32>
    %94 = vector.broadcast %93 : vector<1x128xf32> to vector<128x128xf32>
    %95 = arith.addf %92, %94 : vector<128x128xf32>
    %96 = arith.mulf %95, %95 : vector<128x128xf32>
    %97 = arith.mulf %95, %96 : vector<128x128xf32>
    %cst_57 = arith.constant 4.471500e-02 : f32
    %98 = vector.broadcast %cst_57 : f32 to vector<128x128xf32>
    %99 = arith.mulf %98, %97 : vector<128x128xf32>
    %100 = arith.addf %95, %99 : vector<128x128xf32>
    %cst_58 = arith.constant 0.797884583 : f32
    %101 = vector.broadcast %cst_58 : f32 to vector<128x128xf32>
    %102 = arith.mulf %101, %100 : vector<128x128xf32>
    %103 = math.tanh %102 : vector<128x128xf32>
    %cst_59 = arith.constant 1.000000e+00 : f32
    %104 = vector.broadcast %cst_59 : f32 to vector<128x128xf32>
    %105 = arith.addf %104, %103 : vector<128x128xf32>
    %cst_60 = arith.constant 5.000000e-01 : f32
    %106 = vector.broadcast %cst_60 : f32 to vector<128x128xf32>
    %107 = arith.mulf %106, %105 : vector<128x128xf32>
    %108 = arith.mulf %95, %107 : vector<128x128xf32>
    %109 = vector.shape_cast %108 : vector<128x128xf32> to vector<8x16x128xf32>
    %c0_61 = arith.constant 0 : index
    %c0_62 = arith.constant 0 : index
    %110 = vector.load %arg11[%c0_61, %c0_62] : memref<8x16xf32, #tpu.memory_space<vmem>>, vector<8x16xf32>
    %111 = vector.shape_cast %110 : vector<8x16xf32> to vector<8x16x1xf32>
    %112 = vector.broadcast %111 : vector<8x16x1xf32> to vector<8x16x128xf32>
    %113 = arith.mulf %109, %112 : vector<8x16x128xf32>
    %cst_63 = arith.constant dense<0.000000e+00> : vector<8x128xf32>
    %114 = vector.multi_reduction <add>, %113, %cst_63 [1] : vector<8x16x128xf32> to vector<8x128xf32>
    %cst_64 = arith.constant dense<0.000000e+00> : vector<8x1xf32>
    %115 = vector.multi_reduction <add>, %111, %cst_64 [1] : vector<8x16x1xf32> to vector<8x1xf32>
    %cst_65 = arith.constant 9.99999974E-5 : f32
    %116 = vector.broadcast %cst_65 : f32 to vector<8x1xf32>
    %117 = arith.maximumf %115, %116 : vector<8x1xf32>
    %118 = vector.broadcast %117 : vector<8x1xf32> to vector<8x128xf32>
    %119 = arith.divf %114, %118 : vector<8x128xf32>
    %120 = arith.mulf %119, %119 : vector<8x128xf32>
    %cst_66 = arith.constant dense<0.000000e+00> : vector<8xf32>
    %121 = vector.multi_reduction <add>, %120, %cst_66 [1] : vector<8x128xf32> to vector<8xf32>
    %122 = vector.shape_cast %121 : vector<8xf32> to vector<8x1xf32>
    %123 = math.sqrt %122 : vector<8x1xf32>
    %cst_67 = arith.constant 9.99999996E-13 : f32
    %124 = vector.broadcast %cst_67 : f32 to vector<8x1xf32>
    %125 = arith.maximumf %123, %124 : vector<8x1xf32>
    %126 = vector.broadcast %125 : vector<8x1xf32> to vector<8x128xf32>
    %127 = arith.divf %119, %126 : vector<8x128xf32>
    %c0_68 = arith.constant 0 : index
    %c0_69 = arith.constant 0 : index
    %128 = vector.load %arg16[%c0_68, %c0_69] : memref<8x128xf32, #tpu.memory_space<vmem>>, vector<8x128xf32>
    tpu.vector_store %arg16[%c0_68, %c0_69], %127 {strides = array<i32>} : memref<8x128xf32, #tpu.memory_space<vmem>>, vector<8x128xf32>,
    return
  }
}

</mosaic_0001>

<bundles_post_ra>
// kernel: forward.1
= control target key start
LH: loop header
LB: loop body
LE: loop exit
PB: predicated region body
PF: predicated region fallthrough
CT: control target
= control target key end

     0   :  { %vm1641_vm8 = vcmask 523264   ;;  %s5219_s1 = inlined_call_operand.vmem [shape: bf16[768,128], index: 1, kind: input, shape index: {}]   ;;  %s5220_s0 = inlined_call_operand.vmem [shape: bf16[8,768], index: 0, kind: input, shape index: {}]   ;;  %s5221_s2 = inlined_call_operand.vmem [shape: f32[1,128], index: 2, kind: input, shape index: {}]   ;;  %s5222_s3 = inlined_call_operand.vmem [shape: f32[1,128], index: 3, kind: input, shape index: {}]   ;;  %s5223_s5 = inlined_call_operand.vmem [shape: f32[1,128], index: 5, kind: input, shape index: {}]   ;;  %s5224_s4 = inlined_call_operand.vmem [shape: bf16[128,128], index: 4, kind: input, shape index: {}]   ;;  %s5225_s6 = inlined_call_operand.vmem [shape: bf16[128,512], index: 6, kind: input, shape index: {}]   ;;  %s5226_s10 = inlined_call_operand.vmem [shape: s32[128,1], index: 10, kind: input, shape index: {}]   ;;  %s5227_s8 = inlined_call_operand.vmem [shape: bf16[512,256], index: 8, kind: input, shape index: {}]   ;;  %s5228_s7 = inlined_call_operand.vmem [shape: f32[1,512], index: 7, kind: input, shape index: {}]   ;;  %s5229_s12 = inlined_call_operand.vmem [shape: bf16[64,128], index: 12, kind: input, shape index: {}]   ;;  %s5230_s14 = inlined_call_operand.vmem [shape: bf16[128,128], index: 14, kind: input, shape index: {}]   ;;  %s5231_s9 = inlined_call_operand.vmem [shape: f32[1,256], index: 9, kind: input, shape index: {}]   ;;  %s5232_s13 = inlined_call_operand.vmem [shape: f32[128,128], index: 13, kind: input, shape index: {}]   ;;  %s5233_s15 = inlined_call_operand.vmem [shape: f32[1,128], index: 15, kind: input, shape index: {}]   ;;  %s5234_s11 = inlined_call_operand.vmem [shape: f32[8,16], index: 11, kind: input, shape index: {}]   ;;  %s5235_s17 = inlined_call_operand.vmem [shape: f32[8,128], index: 17, kind: output, shape index: {1}]   ;;  %s5236_s16 = inlined_call_operand.vmem [shape: f32[8,128], index: 16, kind: output, shape index: {0}]  }
   0x1   :  { %5245 = sst [smem:[#allocation3_spill]] %s5219_s1 }
   0x2   :  { %5246 = sst [smem:[#allocation4_spill]] %s5220_s0 }
   0x3   :  { %s5247_s26 = sld [smem:[#allocation3_spill]] }
   0x4   :  { %s5248_s24 = sld [smem:[#allocation4_spill]] }
   0x9   :  { %v3296_v0 = vld [vmem:[%s5247_s26 + $0x78] sm:$0xff]  ;;  %v3295_v1 = vld [vmem:[%s5247_s26 + $0x70] sm:$0xff]  ;;  %v3294_v4 = vld [vmem:[%s5247_s26 + $0x68] sm:$0xff] }
   0xa   :  { %481 = vmatpush.bf16.msra.mxu2 %v3296_v0  ;;  %v3288_v2 = vld [vmem:[%s5247_s26 + $0x38] sm:$0xff]  ;;  %v3287_v3 = vld [vmem:[%s5247_s26 + $0x30] sm:$0xff]  ;;  %v3286_v5 = vld [vmem:[%s5247_s26 + $0x28] sm:$0xff] }
   0xb   :  { %468 = vmatpush.bf16.msra.mxu0 %v3288_v2  ;;  %v3293_v6 = vld [vmem:[%s5247_s26 + $0x60] sm:$0xff]  ;;  %v3292_v8 = vld [vmem:[%s5247_s26 + $0x58] sm:$0xff]  ;;  %v3291_v10 = vld [vmem:[%s5247_s26 + $0x50] sm:$0xff] }
   0xc   :  { %v3285_v7 = vld [vmem:[%s5247_s26 + $0x20] sm:$0xff]  ;;  %v3284_v9 = vld [vmem:[%s5247_s26 + $0x18] sm:$0xff]  ;;  %v3283_v11 = vld [vmem:[%s5247_s26 + $0x10] sm:$0xff] }
   0xd   :  { %v3290_v12 = vld [vmem:[%s5247_s26 + $0x48] sm:$0xff]  ;;  %v56_v13 = vld [vmem:[%s5248_s24] sm:$0xff]  ;;  %v3304_v17 = vld [vmem:[%s5247_s26 + $0xb8] sm:$0xff] }
   0xe   :  { %482 = vmatpush.bf16.msra.mxu2 %v3295_v1  ;;  %v3282_v14 = vld [vmem:[%s5247_s26 + $0x8] sm:$0xff]  ;;  %v163_v15 = vunpack.c.h.b16 %v56_v13  ;;  %v3289_v16 = vld [vmem:[%s5247_s26 + $0x40] sm:$0xff]  ;;  %v162_v18 = vunpack.c.l.b16 %v56_v13  ;;  %v3328_v20 = vld [vmem:[%s5247_s26 + $0x178] sm:$0xff] }
   0xf   :  { %469 = vmatpush.bf16.msra.mxu0 %v3287_v3  ;;  %v3281_v19 = vld [vmem:[%s5247_s26] sm:$0xff]  ;;  %v3320_v22 = vld [vmem:[%s5247_s26 + $0x138] sm:$0xff]  ;;  %533 = vmatpush.bf16.msra.mxu1 %v3328_v20  ;;  %v3303_v23 = vld [vmem:[%s5247_s26 + $0xb0] sm:$0xff] }
  0x10   :  { %v169_v21 = vpack.c.b16 %v163_v15, %v163_v15  ;;  %v168_v24 = vpack.c.b16 %v162_v18, %v162_v18  ;;  %v3327_v25 = vld [vmem:[%s5247_s26 + $0x170] sm:$0xff]  ;;  %v3302_v27 = vld [vmem:[%s5247_s26 + $0xa8] sm:$0xff]  ;;  %v3301_v30 = vld [vmem:[%s5247_s26 + $0xa0] sm:$0xff] }
  0x11   :  { %v3319_v26 = vld [vmem:[%s5247_s26 + $0x130] sm:$0xff]  ;;  %v3326_v28 = vld [vmem:[%s5247_s26 + $0x168] sm:$0xff]  ;;  %v3325_v31 = vld [vmem:[%s5247_s26 + $0x160] sm:$0xff] }
  0x12   :  { %483 = vmatpush.bf16.msra.mxu2 %v3294_v4  ;;  %v3318_v29 = vld [vmem:[%s5247_s26 + $0x128] sm:$0xff]  ;;  %v3317_v32 = vld [vmem:[%s5247_s26 + $0x120] sm:$0xff]  ;;  %v3300_v33 = vld [vmem:[%s5247_s26 + $0x98] sm:$0xff] }
  0x13   :  { %470 = vmatpush.bf16.msra.mxu0 %v3286_v5  ;;  %534 = vmatpush.bf16.msra.mxu1 %v3327_v25  ;;  %v3324_v34 = vld [vmem:[%s5247_s26 + $0x158] sm:$0xff]  ;;  %v3299_v36 = vld [vmem:[%s5247_s26 + $0x90] sm:$0xff]  ;;  %v3298_v39 = vld [vmem:[%s5247_s26 + $0x88] sm:$0xff] }
  0x14   :  { %v3316_v35 = vld [vmem:[%s5247_s26 + $0x118] sm:$0xff]  ;;  %v3323_v37 = vld [vmem:[%s5247_s26 + $0x150] sm:$0xff]  ;;  %v57_v40 = vld [vmem:[%s5248_s24 + $0x8] sm:$0xff] }
  0x15   :  { %v3315_v38 = vld [vmem:[%s5247_s26 + $0x110] sm:$0xff]  ;;  %v3322_v41 = vld [vmem:[%s5247_s26 + $0x148] sm:$0xff]  ;;  %v164_v43 = vunpack.c.l.b16 %v57_v40  ;;  %v3297_v45 = vld [vmem:[%s5247_s26 + $0x80] sm:$0xff]  ;;  %v165_v60 = vunpack.c.h.b16 %v57_v40 }
  0x16   :  { %484 = vmatpush.bf16.msra.mxu2 %v3293_v6  ;;  %v3314_v42 = vld [vmem:[%s5247_s26 + $0x108] sm:$0xff]  ;;  %v58_v44 = vld [vmem:[%s5248_s24 + $0x10] sm:$0xff]  ;;  %v3312_v46 = vld [vmem:[%s5247_s26 + $0xf8] sm:$0xff] }
  0x17   :  { %471 = vmatpush.bf16.msra.mxu0 %v3285_v7  ;;  %535 = vmatpush.bf16.msra.mxu1 %v3326_v28  ;;  %v3321_v47 = vld [vmem:[%s5247_s26 + $0x140] sm:$0xff]  ;;  %v166_v48 = vunpack.c.l.b16 %v58_v44  ;;  %v167_v50 = vunpack.c.h.b16 %v58_v44  ;;  %v170_v51 = vpack.c.b16 %v164_v43, %v164_v43  ;;  %v3311_v53 = vld [vmem:[%s5247_s26 + $0xf0] sm:$0xff]  ;;  %v3310_v55 = vld [vmem:[%s5247_s26 + $0xe8] sm:$0xff]  ;;  %v171_v62 = vpack.c.b16 %v165_v60, %v165_v60 }
  0x18   :  { %v3313_v49 = vld [vmem:[%s5247_s26 + $0x100] sm:$0xff]  ;;  %v3308_v57 = vld [vmem:[%s5247_s26 + $0xd8] sm:$0xff]  ;;  %v3307_v58 = vld [vmem:[%s5247_s26 + $0xd0] sm:$0xff] }
  0x19   :  { %v173_v52 = vpack.c.b16 %v167_v50, %v167_v50  ;;  %v172_v54 = vpack.c.b16 %v166_v48, %v166_v48  ;;  %v3309_v56 = vld [vmem:[%s5247_s26 + $0xe0] sm:$0xff]  ;;  %v3306_v59 = vld [vmem:[%s5247_s26 + $0xc8] sm:$0xff]  ;;  %v3336_v0 = vld [vmem:[%s5224_s4 + $0x38] sm:$0xff] }
  0x1a   :  { %485 = vmatpush.bf16.msra.mxu2 %v3292_v8  ;;  %v3305_v61 = vld [vmem:[%s5247_s26 + $0xc0] sm:$0xff]  ;;  %v3335_v3 = vld [vmem:[%s5224_s4 + $0x30] sm:$0xff]  ;;  %v3334_v4 = vld [vmem:[%s5224_s4 + $0x28] sm:$0xff] }
  0x1b   :  { %472 = vmatpush.bf16.msra.mxu0 %v3284_v9  ;;  %536 = vmatpush.bf16.msra.mxu1 %v3325_v31  ;;  %v3333_v6 = vld [vmem:[%s5224_s4 + $0x20] sm:$0xff]  ;;  %v3332_v7 = vld [vmem:[%s5224_s4 + $0x18] sm:$0xff]  ;;  %v3331_v9 = vld [vmem:[%s5224_s4 + $0x10] sm:$0xff] }
  0x1c   :  { %v2937_v43 = vld [vmem:[%s5225_s6 + $0xe0] sm:$0xf]  ;;  %v3367_v44 = vld [vmem:[%s5225_s6 + $0xec] sm:$0xf0]  ;;  %v2945_v48 = vld [vmem:[%s5225_s6 + $0xe8] sm:$0xf] }
  0x1d   :  { %v2929_v60 = vld [vmem:[%s5225_s6 + $0xc8] sm:$0xf] }
  0x1e   :  { %486 = vmatpush.bf16.msra.mxu2 %v3291_v10 }
  0x1f   :  { %473 = vmatpush.bf16.msra.mxu0 %v3283_v11  ;;  %537 = vmatpush.bf16.msra.mxu1 %v3324_v34  ;;  %v3330_v11 = vld [vmem:[%s5224_s4 + $0x8] sm:$0xff] }
  0x22   :  { %487 = vmatpush.bf16.msra.mxu2 %v3290_v12 }
  0x23   :  { %474 = vmatpush.bf16.msra.mxu0 %v3282_v14  ;;  %538 = vmatpush.bf16.msra.mxu1 %v3323_v37  ;;  %v3329_v14 = vld [vmem:[%s5224_s4] sm:$0xff] }
  0x26   :  { %488 = vmatpush.bf16.msra.mxu2 %v3289_v16 }
  0x27   :  { %475 = vmatpush.bf16.msra.mxu0 %v3281_v19  ;;  %539 = vmatpush.bf16.msra.mxu1 %v3322_v41 }
  0x29   :  { %489 = vmatmul.bf16.vlgmr.msra.gmra.mxu2 %v169_v21 }
  0x2a   :  { %494 = vmatpush.bf16.msrb.mxu2 %v3304_v17  ;;  %476 = vmatmul.bf16.vlgmr.msra.gmra.mxu0 %v168_v24  ;;  %v3466_v17 = vld [vmem:[%s5221_s2] ss:$0 sm:$0xff] }
  0x2b   :  { %520 = vmatpush.bf16.msrb.mxu0 %v3320_v22  ;;  %540 = vmatpush.bf16.msra.mxu1 %v3321_v47  ;;  %v3467_v24 = vld [vmem:[%s5222_s3] ss:$0 sm:$0xff]  ;;  %v2939_v47 = vld [vmem:[%s5225_s6 + $0xf0] sm:$0xf0] }
  0x2e   :  { %495 = vmatpush.bf16.msrb.mxu2 %v3303_v23  ;;  %541 = vmatmul.bf16.vlgmr.msra.gmra.mxu1 %v173_v52  ;;  %v3366_v52 = vld [vmem:[%s5225_s6 + $0xec] sm:$0xf] }
  0x2f   :  { %521 = vmatpush.bf16.msrb.mxu0 %v3319_v26 }
  0x32   :  { %496 = vmatpush.bf16.msrb.mxu2 %v3302_v27 }
  0x33   :  { %522 = vmatpush.bf16.msrb.mxu0 %v3318_v29  ;;  %v3468_v29 = vld [vmem:[%s5223_s5] ss:$0 sm:$0xff] }
  0x36   :  { %497 = vmatpush.bf16.msrb.mxu2 %v3301_v30 }
  0x37   :  { %523 = vmatpush.bf16.msrb.mxu0 %v3317_v32 }
  0x3a   :  { %498 = vmatpush.bf16.msrb.mxu2 %v3300_v33 }
  0x3b   :  { %524 = vmatpush.bf16.msrb.mxu0 %v3316_v35 }
  0x3e   :  { %499 = vmatpush.bf16.msrb.mxu2 %v3299_v36 }
  0x3f   :  { %525 = vmatpush.bf16.msrb.mxu0 %v3315_v38 }
  0x42   :  { %500 = vmatpush.bf16.msrb.mxu2 %v3298_v39 }
  0x43   :  { %526 = vmatpush.bf16.msrb.mxu0 %v3314_v42 }
  0x46   :  { %501 = vmatpush.bf16.msrb.mxu2 %v3297_v45  ;;  %v3365_v45 = vld [vmem:[%s5225_s6 + $0xe4] sm:$0xf] }
  0x47   :  { %527 = vmatpush.bf16.msrb.mxu0 %v3313_v49  ;;  %v3368_v49 = vld [vmem:[%s5225_s6 + $0xf4] sm:$0xf0]  ;;  %v2942_v50 = vor.u32 %v3365_v45, %v2939_v47  ;;  %v3346_v47 = vld [vmem:[%s5225_s6 + $0x4c] sm:$0xf] }
  0x49   :  { %502 = vmatmul.bf16.vlgmr.msrb.gmra.mxu2 %v170_v51  ;;  %v2946_v51 = vor.u32 %v3368_v49, %v2945_v48  ;;  %v2867_v48 = vld [vmem:[%s5225_s6 + $0x58] sm:$0xf0] }
  0x4a   :  { %507 = vmatpush.bf16.msra.mxu2 %v3312_v46  ;;  %528 = vmatmul.bf16.vlgmr.msrb.gmra.mxu0 %v172_v54  ;;  %v2938_v46 = vor.u32 %v3367_v44, %v2937_v43  ;;  %v2859_v43 = vld [vmem:[%s5225_s6 + $0x50] sm:$0xf0]  ;;  %v2865_v44 = vld [vmem:[%s5225_s6 + $0x48] sm:$0xf] }
  0x4b   :  { %889 = vmatpush.bf16.msra.mxu0 %v2942_v50  ;;  %902 = vmatpush.bf16.msrb.mxu1 %v2946_v51  ;;  %v2841_v51 = vld [vmem:[%s5225_s6 + $0x20] sm:$0xf] }
  0x4c   :  { %876 = vmatpush.bf16.msra.mxu3 %v2938_v46  ;;  %v3348_v46 = vld [vmem:[%s5225_s6 + $0x54] sm:$0xf0] }
  0x4d   :  { %v2866_v50 = vor.u32 %v3348_v46, %v2865_v44  ;;  %v1478_v44 = vld [vmem:[%s5226_s10 + $0x38] sm:$0xff] }
  0x4e   :  { %508 = vmatpush.bf16.msra.mxu2 %v3311_v53  ;;  %v2947_v53 = vld [vmem:[%s5225_s6 + $0xf8] sm:$0xf0] }
  0x4f   :  { %v2950_v54 = vor.u32 %v3366_v52, %v2947_v53  ;;  %v3343_v52 = vld [vmem:[%s5225_s6 + $0x2c] sm:$0xf0]  ;;  %v3341_v53 = vld [vmem:[%s5225_s6 + $0x24] sm:$0xf] }
  0x52   :  { %509 = vmatpush.bf16.msra.mxu2 %v3310_v55  ;;  %v2921_v55 = vld [vmem:[%s5225_s6 + $0xc0] sm:$0xf] }
  0x56   :  { %510 = vmatpush.bf16.msra.mxu2 %v3309_v56  ;;  %v3363_v56 = vld [vmem:[%s5225_s6 + $0xcc] sm:$0xf0] }
  0x5a   :  { %511 = vmatpush.bf16.msra.mxu2 %v3308_v57  ;;  %v3361_v57 = vld [vmem:[%s5225_s6 + $0xc4] sm:$0xf] }
  0x5e   :  { %512 = vmatpush.bf16.msra.mxu2 %v3307_v58  ;;  %v2922_v58 = vor.u32 %v3363_v56, %v2921_v55  ;;  %v2870_v55 = vor.u32 %v3346_v47, %v2867_v48  ;;  %v2843_v56 = vld [vmem:[%s5225_s6 + $0x30] sm:$0xf0]  ;;  %v3065_v47 = vld [vmem:[%s5227_s8 + $0xe0] sm:$0xf]  ;;  %v3398_v48 = vld [vmem:[%s5227_s8 + $0xe4] sm:$0xf0] }
  0x60   :  { %877 = vmatpush.bf16.msra.mxu3 %v2922_v58  ;;  %v3344_v58 = vld [vmem:[%s5225_s6 + $0x34] sm:$0xf0] }
  0x62   :  { %513 = vmatpush.bf16.msra.mxu2 %v3306_v59  ;;  %v2923_v59 = vld [vmem:[%s5225_s6 + $0xd0] sm:$0xf0] }
  0x66   :  { %514 = vmatpush.bf16.msra.mxu2 %v3305_v61  ;;  %v3364_v61 = vld [vmem:[%s5225_s6 + $0xd4] sm:$0xf0] }
  0x69   :  { %515 = vmatmul.bf16.vlgmr.msra.gmra.mxu2 %v171_v62  ;;  %v2926_v62 = vor.u32 %v3361_v57, %v2923_v59  ;;  %v2849_v57 = vld [vmem:[%s5225_s6 + $0x28] sm:$0xf]  ;;  %v3342_v59 = vld [vmem:[%s5225_s6 + $0x2c] sm:$0xf] }
  0x6a   :  { %620 = vmatpush.bf16.msrb.mxu2 %v3336_v0  ;;  %v3362_v0 = vld [vmem:[%s5225_s6 + $0xcc] sm:$0xf] }
  0x6b   :  { %890 = vmatpush.bf16.msra.mxu0 %v2926_v62  ;;  %v2846_v62 = vor.u32 %v3341_v53, %v2843_v56  ;;  %v3384_v53 = vld [vmem:[%s5227_s8 + $0x74] sm:$0xf0] }
  0x6e   :  { %621 = vmatpush.bf16.msrb.mxu2 %v3335_v3  ;;  %v2905_v3 = vld [vmem:[%s5225_s6 + $0xa0] sm:$0xf] }
  0x72   :  { %622 = vmatpush.bf16.msrb.mxu2 %v3334_v4  ;;  %v3359_v4 = vld [vmem:[%s5225_s6 + $0xac] sm:$0xf0] }
  0x76   :  { %623 = vmatpush.bf16.msrb.mxu2 %v3333_v6  ;;  %v2906_v6 = vor.u32 %v3359_v4, %v2905_v3  ;;  %v2827_v4 = vld [vmem:[%s5225_s6 + $0x10] sm:$0xf0] }
  0x78   :  { %878 = vmatpush.bf16.msra.mxu3 %v2906_v6  ;;  %v3340_v6 = vld [vmem:[%s5225_s6 + $0x14] sm:$0xf0] }
  0x7a   :  { %624 = vmatpush.bf16.msrb.mxu2 %v3332_v7  ;;  %v2907_v7 = vld [vmem:[%s5225_s6 + $0xb0] sm:$0xf0] }
  0x7e   :  { %625 = vmatpush.bf16.msrb.mxu2 %v3331_v9  ;;  %v3360_v9 = vld [vmem:[%s5225_s6 + $0xb4] sm:$0xf0] }
  0x82   :  { %626 = vmatpush.bf16.msrb.mxu2 %v3330_v11 }
  0x86   :  { %627 = vmatpush.bf16.msrb.mxu2 %v3329_v14 }
  0x8a   :  { %915 = vmatpush.bf16.msra.mxu2 %v2950_v54 }
  0xa7   :  { %v477_v63 = vpop.f32.mrf.mxu0 }
  0xa8   :  { %v478_v18 = vadd.f32 %v3466_v17, %v477_v63  ;;  %v2930_v63 = vor.u32 %v3364_v61, %v2929_v60  ;;  %v3353_v17 = vld [vmem:[%s5225_s6 + $0x84] sm:$0xf]  ;;  %v2842_v60 = vor.u32 %v3343_v52, %v2841_v51  ;;  %v2851_v61 = vld [vmem:[%s5225_s6 + $0x38] sm:$0xf0]  ;;  %v3414_v51 = vld [vmem:[%s5227_s8 + $0x164] sm:$0xf0] }
  0xa9   :  { %v2854_v3 = vor.u32 %v3342_v59, %v2851_v61  ;;  %v3009_v52 = vld [vmem:[%s5227_s8 + $0x70] sm:$0xf]  ;;  %v3432_v59 = vld [vmem:[%s5227_s8 + $0x1f4] sm:$0xf0] }
  0xaa   :  { %903 = vmatpush.bf16.msrb.mxu1 %v2930_v63  ;;  %v2850_v63 = vor.u32 %v3344_v58, %v2849_v57  ;;  %v3010_v57 = vor.u32 %v3384_v53, %v3009_v52  ;;  %v3201_v58 = vld [vmem:[%s5227_s8 + $0x1f0] sm:$0xf]  ;;  %v3374_v52 = vld [vmem:[%s5227_s8 + $0x24] sm:$0xf0] }
  0xab   :  { %v542_v8 = vpop.f32.mrf.mxu1  ;;  %v3202_v61 = vor.u32 %v3432_v59, %v3201_v58  ;;  %v3404_v58 = vld [vmem:[%s5227_s8 + $0x114] sm:$0xf0] }
  0xac   :  { %v490_v1 = vpop.f32.mrf.mxu2 }
  0xad   :  { %v491_v19 = vadd.f32 %v490_v1, %v478_v18  ;;  %v2931_v1 = vld [vmem:[%s5225_s6 + $0xd8] sm:$0xf0] }
  0xaf   :  { %v479_v2 = vpop.f32.mrf.mxu0 }
  0xb0   :  { %v2934_v2 = vor.u32 %v3362_v0, %v2931_v1  ;;  %v2825_v0 = vld [vmem:[%s5225_s6] sm:$0xf]  ;;  %v3339_v1 = vld [vmem:[%s5225_s6 + $0xc] sm:$0xf0] }
  0xb2   :  { %916 = vmatpush.bf16.msra.mxu2 %v2934_v2  ;;  %v3337_v2 = vld [vmem:[%s5225_s6 + $0x4] sm:$0xf] }
  0xb3   :  { %v544_v13 = vpop.f32.mrf.mxu1 }
  0xb4   :  { %v492_v5 = vpop.f32.mrf.mxu2  ;;  %v2915_v13 = vld [vmem:[%s5225_s6 + $0xb8] sm:$0xf0] }
  0xb5   :  { %v3357_v5 = vld [vmem:[%s5225_s6 + $0xa4] sm:$0xf] }
  0xc7   :  { %v529_v10 = vpop.f32.mrf.mxu0 }
  0xcc   :  { %v503_v12 = vpop.f32.mrf.mxu2 }
  0xcd   :  { %v504_v20 = vadd.f32 %v503_v12, %v491_v19  ;;  %v3358_v12 = vld [vmem:[%s5225_s6 + $0xac] sm:$0xf]  ;;  %v2891_v19 = vld [vmem:[%s5225_s6 + $0x90] sm:$0xf0] }
  0xce   :  { %v2918_v14 = vor.u32 %v3358_v12, %v2915_v13 }
  0xcf   :  { %v531_v15 = vpop.f32.mrf.mxu0 }
  0xd0   :  { %v2889_v15 = vld [vmem:[%s5225_s6 + $0x80] sm:$0xf]  ;;  %917 = vmatpush.bf16.msra.mxu2 %v2918_v14 }
  0xd4   :  { %v505_v16 = vpop.f32.mrf.mxu2 }
  0xd5   :  { %v3355_v16 = vld [vmem:[%s5225_s6 + $0x8c] sm:$0xf0] }
  0xd6   :  { %v2890_v18 = vor.u32 %v3355_v16, %v2889_v15 }
  0xd8   :  { %879 = vmatpush.bf16.msra.mxu3 %v2890_v18  ;;  %v1472_v18 = vld [vmem:[%s5226_s10 + $0x8] sm:$0xff] }
  0xec   :  { %v516_v21 = vpop.f32.mrf.mxu2 }
  0xed   :  { %v517_v22 = vadd.f32 %v516_v21, %v504_v20  ;;  %v2897_v20 = vld [vmem:[%s5225_s6 + $0x88] sm:$0xf]  ;;  %v3356_v21 = vld [vmem:[%s5225_s6 + $0x94] sm:$0xf0] }
  0xef   :  { %v530_v23 = vadd.f32 %v529_v10, %v517_v22  ;;  %v2910_v10 = vor.u32 %v3357_v5, %v2907_v7  ;;  %v2894_v22 = vor.u32 %v3353_v17, %v2891_v19  ;;  %v2833_v5 = vld [vmem:[%s5225_s6 + $0x8] sm:$0xf]  ;;  %v3338_v7 = vld [vmem:[%s5225_s6 + $0xc] sm:$0xf]  ;;  %v3550_v19 = vmov 0  }
  0xf0   :  { %v2834_v12 = vor.u32 %v3340_v6, %v2833_v5  ;;  %3456 = vset.pattern.permute.xlu1 %v3550_v19  ;;  %3457 = vset.pattern.permute.xlu2 %v3550_v19  ;;  %v3412_v5 = vld [vmem:[%s5227_s8 + $0x154] sm:$0xf0] }
  0xf1   :  { %v543_v25 = vadd.f32 %v542_v8, %v530_v23  ;;  %v2913_v8 = vld [vmem:[%s5225_s6 + $0xa8] sm:$0xf]  ;;  %891 = vmatpush.bf16.msra.mxu0 %v2910_v10  ;;  %v2898_v23 = vor.u32 %v3356_v21, %v2897_v20  ;;  %v1474_v20 = vld [vmem:[%s5226_s10 + $0x18] sm:$0xff]  ;;  %1493 = vperm.xlu1 %3456, %v1472_v18  }
  0xf2   :  { %v2914_v11 = vor.u32 %v3360_v9, %v2913_v8  ;;  %v2835_v8 = vld [vmem:[%s5225_s6 + $0x18] sm:$0xf0]  ;;  %v2826_v9 = vor.u32 %v3339_v1, %v2825_v0  ;;  %1499 = vperm.xlu2 %3457, %v1474_v20   ;;  %3455 = vset.pattern.permute.xlu0 %v3550_v19  ;;  %v3001_v0 = vld [vmem:[%s5227_s8 + $0x60] sm:$0xf]  ;;  %v3382_v1 = vld [vmem:[%s5227_s8 + $0x64] sm:$0xf0] }
  0xf3   :  { %v550_v26 = vadd.f32 %v3467_v24, %v543_v25  ;;  %v3354_v24 = vld [vmem:[%s5225_s6 + $0x8c] sm:$0xf]  ;;  %v2899_v25 = vld [vmem:[%s5225_s6 + $0x98] sm:$0xf0]  ;;  %v2838_v14 = vor.u32 %v3338_v7, %v2835_v8  ;;  %v3002_v6 = vor.u32 %v3382_v1, %v3001_v0  ;;  %v3193_v8 = vld [vmem:[%s5227_s8 + $0x1e0] sm:$0xf] }
  0xf4   :  { %v518_v27 = vpop.f32.mrf.mxu2  ;;  %904 = vmatpush.bf16.msrb.mxu1 %v2914_v11  ;;  %v2830_v11 = vor.u32 %v3337_v2, %v2827_v4  ;;  %v3121_v4 = vld [vmem:[%s5227_s8 + $0x150] sm:$0xf]  ;;  %v1480_v18 = vld [vmem:[%s5226_s10 + $0x48] sm:$0xff]  ;;  %v3017_v1 = vld [vmem:[%s5227_s8 + $0x80] sm:$0xf] }
  0xf5   :  { %v551_v28 = vpack.c.bf16 %v550_v26, %v550_v26  ;;  %v2873_v26 = vld [vmem:[%s5225_s6 + $0x60] sm:$0xf]  ;;  %v2902_v27 = vor.u32 %v3354_v24, %v2899_v25  ;;  %892 = vmatpush.bf16.msra.mxu0 %v2894_v22  ;;  %v1481_v19 = vld [vmem:[%s5226_s10 + $0x50] sm:$0xff] }
  0xf7   :  { %628 = vmatmul.bf16.vlgmr.msrb.gmra.mxu2 %v551_v28  ;;  %v3351_v28 = vld [vmem:[%s5225_s6 + $0x6c] sm:$0xf0] }
  0xf8   :  { %905 = vmatpush.bf16.msrb.mxu1 %v2898_v23  ;;  %918 = vmatpush.bf16.msra.mxu2 %v2902_v27  ;;  %v1475_v27 = vld [vmem:[%s5226_s10 + $0x20] sm:$0xff] }
  0xfa   :  { %1502 = vperm.xlu2 %3457, %v1475_v27  }
 0x17a   :  { %v629_v30 = vpop.f32.mrf.mxu2 }
 0x17b   :  { %v630_v31 = vadd.f32 %v3468_v29, %v629_v30  ;;  %v3349_v29 = vld [vmem:[%s5225_s6 + $0x64] sm:$0xf]  ;;  %v2875_v30 = vld [vmem:[%s5225_s6 + $0x70] sm:$0xf0] }
 0x17d   :  { %v633_v32 = vmul.f32 %v630_v31, %v630_v31 }
 0x17f   :  { %v634_v33 = vmul.f32 %v633_v32, %v630_v31  ;;  %v2878_v32 = vor.u32 %v3349_v29, %v2875_v30  ;;  %v1471_v29 = vld [vmem:[%s5226_s10] sm:$0xff]  ;;  %v1476_v30 = vld [vmem:[%s5226_s10 + $0x28] sm:$0xff] }
 0x181   :  { %v635_v34 = vmul.f32 0.044715, %v634_v33  ;;  %v2881_v33 = vld [vmem:[%s5225_s6 + $0x68] sm:$0xf]  ;;  %893 = vmatpush.bf16.msra.mxu0 %v2878_v32 }
 0x182   :  { %v631_v35 = vpop.f32.mrf.mxu2 }
 0x183   :  { %v636_v36 = vadd.f32 %v635_v34, %v630_v31  ;;  %v3352_v34 = vld [vmem:[%s5225_s6 + $0x74] sm:$0xf0]  ;;  %v3350_v35 = vld [vmem:[%s5225_s6 + $0x6c] sm:$0xf] }
 0x185   :  { %v637_v37 = vmul.f32 0.7978846, %v636_v36  ;;  %v2882_v36 = vor.u32 %v3352_v34, %v2881_v33  ;;  %v1484_v34 = vld [vmem:[%s5226_s10 + $0x68] sm:$0xff] }
 0x187   :  { %3470 = vtanh.f32 %v637_v37  ;;  %v2883_v37 = vld [vmem:[%s5225_s6 + $0x78] sm:$0xf0]  ;;  %906 = vmatpush.bf16.msrb.mxu1 %v2882_v36 }
 0x18b   :  { %907 = vmatpush.bf16.msrb.mxu1 %v2866_v50  ;;  %v3066_v50 = vor.u32 %v3398_v48, %v3065_v47 }
 0x18d   :  { %v3471_v38 = vpop.eup %3470 }
 0x18e   :  { %v639_v39 = vadd.f32 1.0, %v3471_v38  ;;  %v2857_v38 = vld [vmem:[%s5225_s6 + $0x40] sm:$0xf] }
 0x18f   :  { %908 = vmatpush.bf16.msrb.mxu1 %v2850_v63  ;;  %v3057_v63 = vld [vmem:[%s5227_s8 + $0xd0] sm:$0xf] }
 0x190   :  { %v640_v40 = vmul.f32 0.5, %v639_v39  ;;  %v3347_v39 = vld [vmem:[%s5225_s6 + $0x4c] sm:$0xf0] }
 0x191   :  { %v2858_v45 = vor.u32 %v3347_v39, %v2857_v38  ;;  %v3073_v38 = vld [vmem:[%s5227_s8 + $0xf0] sm:$0xf]  ;;  %v3400_v39 = vld [vmem:[%s5227_s8 + $0xf4] sm:$0xf0] }
 0x192   :  { %v3828_v41 = vmul.f32 %v640_v40, %v630_v31  ;;  %v2874_v31 = vor.u32 %v3351_v28, %v2873_v26  ;;  %v2886_v40 = vor.u32 %v3350_v35, %v2883_v37  ;;  %v1473_v26 = vld [vmem:[%s5226_s10 + $0x10] sm:$0xff] }
 0x193   :  { %909 = vmatpush.bf16.msrb.mxu1 %v2834_v12  ;;  %1496 = vperm.xlu1 %3456, %v1473_v26  }
 0x194   :  { %v642_v42 = vmul.f32 %v3828_v41, %v3828_v41  ;;  %880 = vmatpush.bf16.msra.mxu3 %v2874_v31  ;;  %919 = vmatpush.bf16.msra.mxu2 %v2886_v40  ;;  %v1477_v31 = vld [vmem:[%s5226_s10 + $0x30] sm:$0xff] }
 0x195   :  { %1508 = vperm.xlu2 %3457, %v1477_v31   ;;  %v3137_v40 = vld [vmem:[%s5227_s8 + $0x170] sm:$0xf]  ;;  %v3408_v31 = vld [vmem:[%s5227_s8 + $0x134] sm:$0xf0] }
 0x196   :  { %643 = vadd.xlane.f32.xlu0 %v642_v42  ;;  %v3345_v42 = vld [vmem:[%s5225_s6 + $0x44] sm:$0xf] }
 0x197   :  { %v2862_v49 = vor.u32 %v3345_v42, %v2859_v43  ;;  %v3416_v42 = vld [vmem:[%s5227_s8 + $0x174] sm:$0xf0] }
 0x198   :  { %881 = vmatpush.bf16.msra.mxu3 %v2858_v45  ;;  %920 = vmatpush.bf16.msra.mxu2 %v2870_v55  ;;  %v3074_v45 = vor.u32 %v3400_v39, %v3073_v38  ;;  %v3138_v46 = vor.u32 %v3416_v42, %v3137_v40  ;;  %v1479_v55 = vld [vmem:[%s5226_s10 + $0x40] sm:$0xff]  ;;  %v3390_v42 = vld [vmem:[%s5227_s8 + $0xa4] sm:$0xf0] }
 0x199   :  { %894 = vmatpush.bf16.msra.mxu0 %v2862_v49  ;;  %v3129_v49 = vld [vmem:[%s5227_s8 + $0x160] sm:$0xf] }
 0x19a   :  { %1352 = vmatpush.bf16.msra.mxu1 %v3138_v46  ;;  %v3130_v56 = vor.u32 %v3414_v51, %v3129_v49  ;;  %v3033_v40 = vld [vmem:[%s5227_s8 + $0xa0] sm:$0xf]  ;;  %v3169_v49 = vld [vmem:[%s5227_s8 + $0x1b0] sm:$0xf] }
 0x19b   :  { %1505 = vperm.xlu1 %3456, %v1476_v30   ;;  %v3105_v30 = vld [vmem:[%s5227_s8 + $0x130] sm:$0xf]  ;;  %v1483_v46 = vld [vmem:[%s5226_s10 + $0x60] sm:$0xff]  ;;  %v3034_v53 = vor.u32 %v3390_v42, %v3033_v40  ;;  %v3059_v40 = vld [vmem:[%s5227_s8 + $0xd8] sm:$0xf0] }
 0x19c   :  { %882 = vmatpush.bf16.msra.mxu3 %v2842_v60  ;;  %921 = vmatpush.bf16.msra.mxu2 %v2854_v3  ;;  %v3396_v3 = vld [vmem:[%s5227_s8 + $0xd4] sm:$0xf0]  ;;  %v3106_v39 = vor.u32 %v3408_v31, %v3105_v30  ;;  %v2969_v51 = vld [vmem:[%s5227_s8 + $0x20] sm:$0xf]  ;;  %v3418_v31 = vld [vmem:[%s5227_s8 + $0x184] sm:$0xf0] }
 0x19d   :  { %895 = vmatpush.bf16.msra.mxu0 %v2846_v62  ;;  %1514 = vperm.xlu2 %3457, %v1479_v55   ;;  %v3058_v12 = vor.u32 %v3396_v3, %v3057_v63  ;;  %v3025_v55 = vld [vmem:[%s5227_s8 + $0x90] sm:$0xf]  ;;  %v3081_v3 = vld [vmem:[%s5227_s8 + $0x100] sm:$0xf]  ;;  %v3411_v42 = vld [vmem:[%s5227_s8 + $0x154] sm:$0xf] }
 0x19e   :  { %1353 = vmatpush.bf16.msra.mxu1 %v3130_v56  ;;  %v3388_v56 = vld [vmem:[%s5227_s8 + $0x94] sm:$0xf0] }
 0x19f   :  { %v3026_v63 = vor.u32 %v3388_v56, %v3025_v55  ;;  %v3409_v55 = vld [vmem:[%s5227_s8 + $0x144] sm:$0xf]  ;;  %v3115_v56 = vld [vmem:[%s5227_s8 + $0x148] sm:$0xf0] }
 0x1a0   :  { %883 = vmatpush.bf16.msra.mxu3 %v2826_v9  ;;  %922 = vmatpush.bf16.msra.mxu2 %v2838_v14  ;;  %v3430_v9 = vld [vmem:[%s5227_s8 + $0x1e4] sm:$0xf0]  ;;  %v3049_v14 = vld [vmem:[%s5227_s8 + $0xc0] sm:$0xf] }
 0x1a1   :  { %896 = vmatpush.bf16.msra.mxu0 %v2830_v11  ;;  %v3380_v11 = vld [vmem:[%s5227_s8 + $0x54] sm:$0xf0]  ;;  %v3194_v20 = vor.u32 %v3430_v9, %v3193_v8 }
 0x1a3   :  { %1511 = vperm.xlu1 %3456, %v1478_v44   ;;  %v3406_v44 = vld [vmem:[%s5227_s8 + $0x124] sm:$0xf0] }
 0x1a4   :  { %1326 = vmatpush.bf16.msrb.mxu3 %v3010_v57  ;;  %1365 = vmatpush.bf16.msrb.mxu2 %v3202_v61  ;;  %v3089_v57 = vld [vmem:[%s5227_s8 + $0x110] sm:$0xf]  ;;  %v3161_v61 = vld [vmem:[%s5227_s8 + $0x1a0] sm:$0xf] }
 0x1a5   :  { %1339 = vmatpush.bf16.msrb.mxu0 %v3074_v45  ;;  %1520 = vperm.xlu2 %3457, %v1481_v19   ;;  %v1482_v45 = vld [vmem:[%s5226_s10 + $0x58] sm:$0xff]  ;;  %v3090_v0 = vor.u32 %v3404_v58, %v3089_v57  ;;  %v3118_v57 = vor.u32 %v3409_v55, %v3115_v56  ;;  %v3379_v58 = vld [vmem:[%s5227_s8 + $0x54] sm:$0xf] }
 0x1a6   :  { %v3420_v19 = vld [vmem:[%s5227_s8 + $0x194] sm:$0xf0] }
 0x1a8   :  { %1327 = vmatpush.bf16.msrb.mxu3 %v3002_v6  ;;  %1366 = vmatpush.bf16.msrb.mxu2 %v3194_v20  ;;  %v1486_v6 = vld [vmem:[%s5226_s10 + $0x78] sm:$0xff]  ;;  %v3397_v20 = vld [vmem:[%s5227_s8 + $0xe4] sm:$0xf] }
 0x1a9   :  { %1340 = vmatpush.bf16.msrb.mxu0 %v3066_v50  ;;  %v3424_v50 = vld [vmem:[%s5227_s8 + $0x1b4] sm:$0xf0] }
 0x1aa   :  { %1490 = vperm.xlu0 %3455, %v1471_v29   ;;  %v3392_v29 = vld [vmem:[%s5227_s8 + $0xb4] sm:$0xf0]  ;;  %v3170_v59 = vor.u32 %v3424_v50, %v3169_v49  ;;  %v3429_v49 = vld [vmem:[%s5227_s8 + $0x1e4] sm:$0xf]  ;;  %v3195_v50 = vld [vmem:[%s5227_s8 + $0x1e8] sm:$0xf0] }
 0x1ab   :  { %1517 = vperm.xlu1 %3456, %v1480_v18   ;;  %v3153_v18 = vld [vmem:[%s5227_s8 + $0x190] sm:$0xf] }
 0x1ad   :  { %1341 = vmatpush.bf16.msrb.mxu0 %v3058_v12  ;;  %1526 = vperm.xlu2 %3457, %v1483_v46   ;;  %v3381_v46 = vld [vmem:[%s5227_s8 + $0x64] sm:$0xf] }
 0x1b2   :  { %1529 = vperm.xlu0 %3455, %v1484_v34   ;;  %v3177_v34 = vld [vmem:[%s5227_s8 + $0x1c0] sm:$0xf] }
 0x1b3   :  { %1523 = vperm.xlu1 %3456, %v1482_v45  }
 0x1b5   :  { %1535 = vperm.xlu2 %3457, %v1486_v6   ;;  %v3377_v6 = vld [vmem:[%s5227_s8 + $0x44] sm:$0xf] }
 0x209   :  { %v644_v54 = vpop.xlane.xlu0 %643 }
 0x20a   :  { %3472 = vrsqrt.f32 %v644_v54  ;;  %vm652_vm0 = vcmp.eq.f32.partialorder %v644_v54, inf  ;;  %v655_v23 = vand.u32 2147483648, %v644_v54  ;;  %vm654_vm1 = vcmp.eq.f32.partialorder %v644_v54, 0.0 }
 0x210   :  { %v3473_v10 = vpop.eup %3472 }
 0x211   :  { %v646_v13 = vmul.f32 %v3473_v10, %v644_v54 }
 0x213   :  { %v647_v15 = vmul.f32 %v3473_v10, %v646_v13  ;;  %v3122_v13 = vor.u32 %v3412_v5, %v3121_v4  ;;  %v3402_v4 = vld [vmem:[%s5227_s8 + $0x104] sm:$0xf0]  ;;  %v1485_v5 = vld [vmem:[%s5226_s10 + $0x70] sm:$0xff] }
 0x214   :  { %v3082_v9 = vor.u32 %v3402_v4, %v3081_v3  ;;  %1532 = vperm.xlu1 %3456, %v1485_v5   ;;  %v3407_v3 = vld [vmem:[%s5227_s8 + $0x134] sm:$0xf]  ;;  %v3107_v4 = vld [vmem:[%s5227_s8 + $0x138] sm:$0xf0] }
 0x215   :  { %v648_v16 = vmul.f32 0.5, %v647_v15  ;;  %v3394_v15 = vld [vmem:[%s5227_s8 + $0xc4] sm:$0xf0]  ;;  %1354 = vmatpush.bf16.msra.mxu1 %v3122_v13  ;;  %v3139_v13 = vld [vmem:[%s5227_s8 + $0x178] sm:$0xf0]  ;;  %v3110_v5 = vor.u32 %v3407_v3, %v3107_v4 }
 0x216   :  { %v3050_v26 = vor.u32 %v3394_v15, %v3049_v14  ;;  %v2961_v14 = vld [vmem:[%s5227_s8 + $0x10] sm:$0xf]  ;;  %v3372_v15 = vld [vmem:[%s5227_s8 + $0x14] sm:$0xf0] }
 0x217   :  { %v649_v17 = vsub.f32 1.5, %v648_v16  ;;  %v3113_v16 = vld [vmem:[%s5227_s8 + $0x140] sm:$0xf] }
 0x218   :  { %1342 = vmatpush.bf16.msrb.mxu0 %v3050_v26 }
 0x219   :  { %v650_v21 = vmul.f32 %v3473_v10, %v649_v17  ;;  %v2993_v10 = vld [vmem:[%s5227_s8 + $0x50] sm:$0xf]  ;;  %v3410_v17 = vld [vmem:[%s5227_s8 + $0x144] sm:$0xf0] }
 0x21a   :  { %v3114_v27 = vor.u32 %v3410_v17, %v3113_v16  ;;  %v2962_v17 = vor.u32 %v3372_v15, %v2961_v14  ;;  %v3099_v15 = vld [vmem:[%s5227_s8 + $0x128] sm:$0xf0] }
 0x21b   :  { %v651_v22 = vmul.f32 %v650_v21, %v644_v54  ;;  %v2994_v21 = vor.u32 %v3380_v11, %v2993_v10  ;;  %v3399_v10 = vld [vmem:[%s5227_s8 + $0xf4] sm:$0xf]  ;;  %v3075_v11 = vld [vmem:[%s5227_s8 + $0xf8] sm:$0xf0] }
 0x21c   :  { %1355 = vmatpush.bf16.msra.mxu1 %v3114_v27  ;;  %v3078_v12 = vor.u32 %v3399_v10, %v3075_v11  ;;  %v2953_v27 = vld [vmem:[%s5227_s8] sm:$0xf]  ;;  %v3179_v10 = vld [vmem:[%s5227_s8 + $0x1c8] sm:$0xf0] }
 0x21d   :  { %v653_v24 = vsel %vm652_vm0, %v644_v54, %v651_v22  ;;  %v3185_v22 = vld [vmem:[%s5227_s8 + $0x1d0] sm:$0xf]  ;;  %1328 = vmatpush.bf16.msrb.mxu3 %v2994_v21  ;;  %v3154_v21 = vor.u32 %v3420_v19, %v3153_v18  ;;  %v2979_v18 = vld [vmem:[%s5227_s8 + $0x38] sm:$0xf0]  ;;  %v3423_v19 = vld [vmem:[%s5227_s8 + $0x1b4] sm:$0xf] }
 0x21e   :  { %v656_v25 = vsel %vm654_vm1, %v655_v23, %v653_v24  ;;  %v3428_v23 = vld [vmem:[%s5227_s8 + $0x1d4] sm:$0xf0]  ;;  %v2985_v24 = vld [vmem:[%s5227_s8 + $0x40] sm:$0xf] }
 0x21f   :  { %v657_v28 = vmax.f32 %v656_v25, 1e-12  ;;  %v3378_v25 = vld [vmem:[%s5227_s8 + $0x44] sm:$0xf0] }
 0x220   :  { %1356 = vmatpush.bf16.msra.mxu1 %v3106_v39  ;;  %v3395_v39 = vld [vmem:[%s5227_s8 + $0xd4] sm:$0xf] }
 0x221   :  { %3474 = vrcp.f32 %v657_v28  ;;  %v667_v36 = vand.u32 2147483647, %v657_v28  ;;  %v669_v37 = vand.u32 2147483648, %v657_v28  ;;  %vm663_vm3 = vweird.f32 %v657_v28 }
 0x223   :  { %vm668_vm5 = vcmp.eq.f32.partialorder %v667_v36, 8.507059e+37  ;;  %v670_v60 = vor.u32 1.1754944e-38, %v669_v37  ;;  %v2977_v36 = vld [vmem:[%s5227_s8 + $0x30] sm:$0xf]  ;;  %v3376_v37 = vld [vmem:[%s5227_s8 + $0x34] sm:$0xf0] }
 0x224   :  { %v2978_v48 = vor.u32 %v3376_v37, %v2977_v36  ;;  %v3431_v36 = vld [vmem:[%s5227_s8 + $0x1f4] sm:$0xf]  ;;  %v3203_v37 = vld [vmem:[%s5227_s8 + $0x1f8] sm:$0xf0] }
 0x227   :  { %v3475_v32 = vpop.eup %3474 }
 0x228   :  { %v659_v33 = vmul.f32 %v3475_v32, %v657_v28  ;;  %vm664_vm2 = vweird.f32 %v3475_v32  ;;  %v3041_v28 = vld [vmem:[%s5227_s8 + $0xb0] sm:$0xf] }
 0x229   :  { %vm665_vm4 = vmor %vm663_vm3, %vm664_vm2  ;;  %v3042_v38 = vor.u32 %v3392_v29, %v3041_v28  ;;  %v3370_v28 = vld [vmem:[%s5227_s8 + $0x4] sm:$0xf0]  ;;  %v3145_v29 = vld [vmem:[%s5227_s8 + $0x180] sm:$0xf] }
 0x22a   :  { %v660_v35 = vsub.f32 1.0, %v659_v33  ;;  %v2986_v33 = vor.u32 %v3378_v25, %v2985_v24  ;;  %v3131_v24 = vld [vmem:[%s5227_s8 + $0x168] sm:$0xf0]  ;;  %v2954_v30 = vor.u32 %v3370_v28, %v2953_v27  ;;  %v3091_v27 = vld [vmem:[%s5227_s8 + $0x118] sm:$0xf0] }
 0x22b   :  { %1343 = vmatpush.bf16.msrb.mxu0 %v3042_v38  ;;  %v3206_v38 = vor.u32 %v3431_v36, %v3203_v37  ;;  %v3373_v28 = vld [vmem:[%s5227_s8 + $0x24] sm:$0xf]  ;;  %v3019_v36 = vld [vmem:[%s5227_s8 + $0x88] sm:$0xf0] }
 0x22c   :  { %v661_v43 = vmul.f32 %v3475_v32, %v660_v35  ;;  %v3426_v35 = vld [vmem:[%s5227_s8 + $0x1c4] sm:$0xf0]  ;;  %1329 = vmatpush.bf16.msrb.mxu3 %v2986_v33  ;;  %v3011_v33 = vld [vmem:[%s5227_s8 + $0x78] sm:$0xf0]  ;;  %v3401_v37 = vld [vmem:[%s5227_s8 + $0x104] sm:$0xf] }
 0x22d   :  { %v3178_v47 = vor.u32 %v3426_v35, %v3177_v34  ;;  %v3146_v34 = vor.u32 %v3418_v31, %v3145_v29  ;;  %v2971_v29 = vld [vmem:[%s5227_s8 + $0x28] sm:$0xf0] }
 0x22e   :  { %v662_v54 = vadd.f32 %v3475_v32, %v661_v43  ;;  %v3097_v43 = vld [vmem:[%s5227_s8 + $0x120] sm:$0xf]  ;;  %v2974_v31 = vor.u32 %v3373_v28, %v2971_v29 }
 0x22f   :  { %1344 = vmatpush.bf16.msrb.mxu0 %v3034_v53  ;;  %v3051_v53 = vld [vmem:[%s5227_s8 + $0xc8] sm:$0xf0] }
 0x230   :  { %v666_v62 = vsel %vm665_vm4, %v3475_v32, %v662_v54  ;;  %v3186_v32 = vor.u32 %v3428_v23, %v3185_v22  ;;  %v3098_v54 = vor.u32 %v3406_v44, %v3097_v43  ;;  %1330 = vmatpush.bf16.msrb.mxu3 %v2978_v48  ;;  %v3067_v22 = vld [vmem:[%s5227_s8 + $0xe8] sm:$0xf0]  ;;  %v3413_v23 = vld [vmem:[%s5227_s8 + $0x164] sm:$0xf]  ;;  %v3062_v43 = vor.u32 %v3395_v39, %v3059_v40  ;;  %v3123_v44 = vld [vmem:[%s5227_s8 + $0x158] sm:$0xf0] }
 0x231   :  { %v671_v2 = vsel %vm668_vm5, %v670_v60, %v666_v62  ;;  %v2970_v60 = vor.u32 %v3374_v52, %v2969_v51  ;;  %v3422_v62 = vld [vmem:[%s5227_s8 + $0x1a4] sm:$0xf0]  ;;  %v3070_v25 = vor.u32 %v3397_v20, %v3067_v22  ;;  %v3134_v26 = vor.u32 %v3413_v23, %v3131_v24  ;;  %v3393_v52 = vld [vmem:[%s5227_s8 + $0xc4] sm:$0xf]  ;;  %v3387_v23 = vld [vmem:[%s5227_s8 + $0x94] sm:$0xf] }
 0x232   :  { %v672_v7 = vmul.f32 %v671_v2, %v3828_v41  ;;  %1367 = vmatpush.bf16.msrb.mxu2 %v3186_v32  ;;  %1357 = vmatpush.bf16.msra.mxu1 %v3098_v54  ;;  %v3386_v2 = vld [vmem:[%s5227_s8 + $0x84] sm:$0xf0]  ;;  %v3383_v32 = vld [vmem:[%s5227_s8 + $0x74] sm:$0xf]  ;;  %v3126_v45 = vor.u32 %v3411_v42, %v3123_v44  ;;  %v3198_v51 = vor.u32 %v3429_v49, %v3195_v50  ;;  %v3027_v24 = vld [vmem:[%s5227_s8 + $0x98] sm:$0xf0] }
 0x233   :  { %1345 = vmatpush.bf16.msrb.mxu0 %v3026_v63  ;;  %v3018_v8 = vor.u32 %v3386_v2, %v3017_v1  ;;  %v3014_v35 = vor.u32 %v3383_v32, %v3011_v33  ;;  %v3054_v54 = vor.u32 %v3393_v52, %v3051_v53  ;;  %v3043_v1 = vld [vmem:[%s5227_s8 + $0xb8] sm:$0xf0]  ;;  %v3421_v32 = vld [vmem:[%s5227_s8 + $0x1a4] sm:$0xf]  ;;  %v3163_v33 = vld [vmem:[%s5227_s8 + $0x1a8] sm:$0xf0] }
 0x234   :  { %v673_v41 = vpack.c.bf16 %v672_v7, %v672_v7  ;;  %1331 = vmatpush.bf16.msrb.mxu3 %v2970_v60  ;;  %v3162_v7 = vor.u32 %v3422_v62, %v3161_v61  ;;  %v3427_v60 = vld [vmem:[%s5227_s8 + $0x1d4] sm:$0xf]  ;;  %v3187_v62 = vld [vmem:[%s5227_s8 + $0x1d8] sm:$0xf0]  ;;  %v2955_v49 = vld [vmem:[%s5227_s8 + $0x8] sm:$0xf0] }
 0x235   :  { %v3190_v63 = vor.u32 %v3427_v60, %v3187_v62  ;;  %v3371_v42 = vld [vmem:[%s5227_s8 + $0x14] sm:$0xf]  ;;  %v3417_v50 = vld [vmem:[%s5227_s8 + $0x184] sm:$0xf]  ;;  %v3147_v52 = vld [vmem:[%s5227_s8 + $0x188] sm:$0xf0] }
 0x236   :  { %884 = vmatmul.bf16.vlgmr.msra.gmra.mxu3 %v673_v41  ;;  %897 = vmatmul.bf16.vlgmr.msra.gmra.mxu0 %v673_v41  ;;  %v3419_v44 = vld [vmem:[%s5227_s8 + $0x194] sm:$0xf]  ;;  %v706_v53 = vld [vmem:[%s5228_s7] sm:$0xf] }
 0x237   :  { %910 = vmatmul.bf16.vlgmr.msrb.gmra.mxu1 %v673_v41  ;;  %923 = vmatmul.bf16.vlgmr.msra.gmra.mxu2 %v673_v41  ;;  %v3415_v41 = vld [vmem:[%s5227_s8 + $0x174] sm:$0xf]  ;;  %v709_v55 = vperm.slane %v706_v53, 1  ;;  %v710_v56 = vperm.slane %v706_v53, 2  ;;  %v708_v62 = vperm.slane %v706_v53, 0 }
 0x238   :  { %1368 = vmatpush.bf16.msrb.mxu2 %v3178_v47  ;;  %1358 = vmatpush.bf16.msra.mxu1 %v3090_v0  ;;  %v3142_v16 = vor.u32 %v3415_v41, %v3139_v13  ;;  %v3003_v47 = vld [vmem:[%s5227_s8 + $0x68] sm:$0xf0]  ;;  %v3391_v0 = vld [vmem:[%s5227_s8 + $0xb4] sm:$0xf]  ;;  %v3389_v41 = vld [vmem:[%s5227_s8 + $0xa4] sm:$0xf] }
 0x239   :  { %1346 = vmatpush.bf16.msrb.mxu0 %v3018_v8  ;;  %1332 = vmatpush.bf16.msrb.mxu3 %v2962_v17  ;;  %v3006_v48 = vor.u32 %v3381_v46, %v3003_v47  ;;  %v3046_v2 = vor.u32 %v3391_v0, %v3043_v1  ;;  %v3425_v8 = vld [vmem:[%s5227_s8 + $0x1c4] sm:$0xf]  ;;  %v3375_v17 = vld [vmem:[%s5227_s8 + $0x34] sm:$0xf]  ;;  %v3155_v46 = vld [vmem:[%s5227_s8 + $0x198] sm:$0xf0] }
 0x23a   :  { %v3182_v11 = vor.u32 %v3425_v8, %v3179_v10  ;;  %v3405_v13 = vld [vmem:[%s5227_s8 + $0x124] sm:$0xf]  ;;  %v2982_v20 = vor.u32 %v3375_v17, %v2979_v18  ;;  %v3158_v47 = vor.u32 %v3419_v44, %v3155_v46  ;;  %v711_v0 = vperm.slane %v706_v53, 3  ;;  %v3443_v53 = vld [vmem:[%s5230_s14 + $0x30] sm:$0xff] }
 0x23b   :  { %v3433_v17 = vld [vmem:[%s5229_s12] sm:$0xff]  ;;  %v1487_v18 = vlaneseq }
 0x23c   :  { %1369 = vmatpush.bf16.msrb.mxu2 %v3170_v59  ;;  %1359 = vmatpush.bf16.msra.mxu1 %v3082_v9  ;;  %v2995_v59 = vld [vmem:[%s5227_s8 + $0x58] sm:$0xf0] }
 0x23d   :  { %1391 = vmatpush.bf16.msra.mxu0 %v3078_v12  ;;  %1333 = vmatpush.bf16.msrb.mxu3 %v2954_v30  ;;  %v2998_v61 = vor.u32 %v3379_v58, %v2995_v59  ;;  %v3035_v12 = vld [vmem:[%s5227_s8 + $0xa8] sm:$0xf0] }
 0x23e   :  { %v3038_v14 = vor.u32 %v3389_v41, %v3035_v12 }
 0x240   :  { %1370 = vmatpush.bf16.msrb.mxu2 %v3162_v7  ;;  %1404 = vmatpush.bf16.msrb.mxu1 %v3142_v16  ;;  %v2987_v7 = vld [vmem:[%s5227_s8 + $0x48] sm:$0xf0]  ;;  %v3102_v16 = vor.u32 %v3405_v13, %v3099_v15 }
 0x241   :  { %1392 = vmatpush.bf16.msra.mxu0 %v3070_v25  ;;  %1378 = vmatpush.bf16.msra.mxu3 %v3014_v35  ;;  %v2990_v9 = vor.u32 %v3377_v6, %v2987_v7  ;;  %v3403_v25 = vld [vmem:[%s5227_s8 + $0x114] sm:$0xf]  ;;  %v3166_v35 = vor.u32 %v3421_v32, %v3163_v33 }
 0x242   :  { %v3094_v30 = vor.u32 %v3403_v25, %v3091_v27 }
 0x244   :  { %1371 = vmatpush.bf16.msrb.mxu2 %v3154_v21  ;;  %1405 = vmatpush.bf16.msrb.mxu1 %v3134_v26  ;;  %v3171_v21 = vld [vmem:[%s5227_s8 + $0x1b8] sm:$0xf0]  ;;  %v3030_v26 = vor.u32 %v3387_v23, %v3027_v24 }
 0x245   :  { %1393 = vmatpush.bf16.msra.mxu0 %v3062_v43  ;;  %1379 = vmatpush.bf16.msra.mxu3 %v3006_v48  ;;  %v3174_v22 = vor.u32 %v3423_v19, %v3171_v21  ;;  %v2963_v43 = vld [vmem:[%s5227_s8 + $0x18] sm:$0xf0]  ;;  %v3369_v48 = vld [vmem:[%s5227_s8 + $0x4] sm:$0xf]  ;;  %v4474_v19 = vand.u32 127, %v1487_v18  ;;  %v1491_v21 = vpop.permute.xlu0 %1490 }
 0x247   :  { %vm1537_vm7 = vcmp.eq.s32.totalorder %v1491_v21, %v4474_v19 }
 0x248   :  { %1372 = vmatpush.bf16.msrb.mxu2 %v3146_v34  ;;  %1406 = vmatpush.bf16.msrb.mxu1 %v3126_v45  ;;  %v3385_v34 = vld [vmem:[%s5227_s8 + $0x84] sm:$0xf]  ;;  %v2966_v45 = vor.u32 %v3371_v42, %v2963_v43 }
 0x249   :  { %1394 = vmatpush.bf16.msra.mxu0 %v3054_v54  ;;  %1380 = vmatpush.bf16.msra.mxu3 %v2998_v61  ;;  %v3022_v39 = vor.u32 %v3385_v34, %v3019_v36  ;;  %v3150_v54 = vor.u32 %v3417_v50, %v3147_v52  ;;  %v3444_v52 = vld [vmem:[%s5230_s14 + $0x38] sm:$0xff] }
 0x24c   :  { %1417 = vmatpush.bf16.msra.mxu2 %v3206_v38  ;;  %1407 = vmatpush.bf16.msrb.mxu1 %v3118_v57  ;;  %v3083_v38 = vld [vmem:[%s5227_s8 + $0x108] sm:$0xf0] }
 0x24d   :  { %1395 = vmatpush.bf16.msra.mxu0 %v3046_v2  ;;  %1381 = vmatpush.bf16.msra.mxu3 %v2990_v9  ;;  %v3086_v40 = vor.u32 %v3401_v37, %v3083_v38 }
 0x250   :  { %1418 = vmatpush.bf16.msra.mxu2 %v3198_v51  ;;  %1408 = vmatpush.bf16.msrb.mxu1 %v3110_v5  ;;  %v2958_v51 = vor.u32 %v3369_v48, %v2955_v49 }
 0x251   :  { %1396 = vmatpush.bf16.msra.mxu0 %v3038_v14  ;;  %1382 = vmatpush.bf16.msra.mxu3 %v2982_v20  ;;  %v3435_v14 = vld [vmem:[%s5229_s12 + $0x10] sm:$0xff]  ;;  %v1494_v20 = vpop.permute.xlu1 %1493 }
 0x252   :  { %vm1538_vm6 = vcmp.eq.s32.totalorder %v1494_v20, %v4474_v19 }
 0x254   :  { %1419 = vmatpush.bf16.msra.mxu2 %v3190_v63  ;;  %1409 = vmatpush.bf16.msrb.mxu1 %v3102_v16  ;;  %v3434_v16 = vld [vmem:[%s5229_s12 + $0x8] sm:$0xff] }
 0x255   :  { %1397 = vmatpush.bf16.msra.mxu0 %v3030_v26  ;;  %1383 = vmatpush.bf16.msra.mxu3 %v2974_v31  ;;  %v1500_v26 = vpop.permute.xlu2 %1499 }
 0x256   :  { %vm1540_vm9 = vcmp.eq.s32.totalorder %v1500_v26, %v4474_v19 }
 0x258   :  { %1420 = vmatpush.bf16.msra.mxu2 %v3182_v11  ;;  %1410 = vmatpush.bf16.msrb.mxu1 %v3094_v30  ;;  %v3436_v11 = vld [vmem:[%s5229_s12 + $0x18] sm:$0xff] }
 0x259   :  { %1398 = vmatpush.bf16.msra.mxu0 %v3022_v39  ;;  %1384 = vmatpush.bf16.msra.mxu3 %v2966_v45  ;;  %v1497_v27 = vpop.permute.xlu1 %1496 }
 0x25a   :  { %vm1539_vm10 = vcmp.eq.s32.totalorder %v1497_v27, %v4474_v19 }
 0x25c   :  { %1421 = vmatpush.bf16.msra.mxu2 %v3174_v22  ;;  %1411 = vmatpush.bf16.msrb.mxu1 %v3086_v40  ;;  %v3551_v22 = vmov 0.0  }
 0x25d   :  { %1385 = vmatpush.bf16.msra.mxu3 %v2958_v51  ;;  %v3210_v23 = vsel %vm1538_vm6, 1.0, %v3551_v22  ;;  %v3209_v24 = vsel %vm1537_vm7, 1.0, %v3551_v22  ;;  %v3212_v28 = vsel %vm1540_vm9, 1.0, %v3551_v22  ;;  %v3211_v29 = vsel %vm1539_vm10, 1.0, %v3551_v22  ;;  %v1503_v31 = vpop.permute.xlu2 %1502 }
 0x25e   :  { %v1585_v25 = vpack.c.bf16 %v3210_v23, %v3209_v24  ;;  %v1586_v30 = vpack.c.bf16 %v3212_v28, %v3211_v29  ;;  %vm1541_vm11 = vcmp.eq.s32.totalorder %v1503_v31, %v4474_v19 }
 0x25f   :  { %v3213_v33 = vsel %vm1541_vm11, 1.0, %v3551_v22 }
 0x260   :  { %1422 = vmatpush.bf16.msra.mxu2 %v3166_v35 }
 0x261   :  { %v1506_v32 = vpop.permute.xlu1 %1505 }
 0x262   :  { %vm1542_vm12 = vcmp.eq.s32.totalorder %v1506_v32, %v4474_v19 }
 0x263   :  { %v3214_v34 = vsel %vm1542_vm12, 1.0, %v3551_v22 }
 0x264   :  { %1423 = vmatpush.bf16.msra.mxu2 %v3158_v47  ;;  %v1587_v35 = vpack.c.bf16 %v3214_v34, %v3213_v33 }
 0x265   :  { %v1509_v36 = vpop.permute.xlu2 %1508 }
 0x266   :  { %vm1543_vm13 = vcmp.eq.s32.totalorder %v1509_v36, %v4474_v19 }
 0x267   :  { %v3215_v38 = vsel %vm1543_vm13, 1.0, %v3551_v22 }
 0x268   :  { %1424 = vmatpush.bf16.msra.mxu2 %v3150_v54  ;;  %v1530_v54 = vpop.permute.xlu0 %1529 }
 0x269   :  { %v1512_v37 = vpop.permute.xlu1 %1511  ;;  %vm1550_vm4 = vcmp.eq.s32.totalorder %v1530_v54, %v4474_v19 }
 0x26a   :  { %vm1544_vm14 = vcmp.eq.s32.totalorder %v1512_v37, %v4474_v19  ;;  %v4544_v37 = vshrl.u32 %v1487_v18, 7 }
 0x26b   :  { %v3216_v39 = vsel %vm1544_vm14, 1.0, %v3551_v22 }
 0x26c   :  { %v1588_v40 = vpack.c.bf16 %v3216_v39, %v3215_v38  ;;  %v1601_v39 = vld [vmem:[%s5232_s13] sm:$0xff]  ;;  %3458 = vset.pattern.permute.xlu0 %v4544_v37  ;;  %3460 = vset.pattern.permute.xlu2 %v4544_v37 }
 0x26d   :  { %v1515_v42 = vpop.permute.xlu2 %1514 }
 0x26e   :  { %vm1545_vm15 = vcmp.eq.s32.totalorder %v1515_v42, %v4474_v19 }
 0x26f   :  { %v3217_v44 = vsel %vm1545_vm15, 1.0, %v3551_v22 }
 0x271   :  { %v1518_v43 = vpop.permute.xlu1 %1517 }
 0x272   :  { %vm1546_vm0 = vcmp.eq.s32.totalorder %v1518_v43, %v4474_v19 }
 0x273   :  { %v3218_v45 = vsel %vm1546_vm0, 1.0, %v3551_v22 }
 0x274   :  { %v1589_v46 = vpack.c.bf16 %v3218_v45, %v3217_v44 }
 0x275   :  { %v1521_v47 = vpop.permute.xlu2 %1520 }
 0x276   :  { %vm1547_vm1 = vcmp.eq.s32.totalorder %v1521_v47, %v4474_v19  ;;  %v1602_v47 = vld [vmem:[%s5232_s13 + $0x8] sm:$0xff] }
 0x277   :  { %v3219_v49 = vsel %vm1547_vm1, 1.0, %v3551_v22 }
 0x279   :  { %v1524_v48 = vpop.permute.xlu1 %1523 }
 0x27a   :  { %vm1548_vm2 = vcmp.eq.s32.totalorder %v1524_v48, %v4474_v19  ;;  %v4561_v48 = vld [vmem:[%s5234_s11] sm:$0xff] }
 0x27b   :  { %v3220_v50 = vsel %vm1548_vm2, 1.0, %v3551_v22 }
 0x27c   :  { %v1590_v51 = vpack.c.bf16 %v3220_v50, %v3219_v49  ;;  %v2025_v49 = vperm.slane %v4561_v48, 0 }
 0x27e   :  { %2030 = vperm.xlu0 %3458, %v2025_v49  }
 0x2b3   :  { %v898_v57 = vpop.f32.mrf.mxu0 }
 0x2b4   :  { %v899_v58 = vadd.f32 %v898_v57, %v709_v55  ;;  %v911_v59 = vpop.f32.mrf.mxu1  ;;  %v1527_v55 = vpop.permute.xlu2 %1526 }
 0x2b5   :  { %v912_v60 = vadd.f32 %v911_v59, %v710_v56  ;;  %vm1549_vm3 = vcmp.eq.s32.totalorder %v1527_v55, %v4474_v19 }
 0x2b6   :  { %v929_v61 = vmax.f32 %v899_v58, 0.0  ;;  %v3442_v58 = vld [vmem:[%s5230_s14 + $0x28] sm:$0xff]  ;;  %v3221_v59 = vsel %vm1549_vm3, 1.0, %v3551_v22 }
 0x2b7   :  { %v930_v63 = vmax.f32 %v912_v60, 0.0  ;;  %v3222_v60 = vsel %vm1550_vm4, 1.0, %v3551_v22 }
 0x2b8   :  { %v933_v1 = vpack.c.bf16 %v929_v61, %v929_v61  ;;  %v3441_v61 = vld [vmem:[%s5230_s14 + $0x20] sm:$0xff] }
 0x2b9   :  { %v934_v2 = vpack.c.bf16 %v930_v63, %v930_v63  ;;  %v885_v3 = vpop.f32.mrf.mxu3  ;;  %v1591_v63 = vpack.c.bf16 %v3222_v60, %v3221_v59 }
 0x2ba   :  { %v886_v4 = vadd.f32 %v885_v3, %v708_v62  ;;  %v924_v5 = vpop.f32.mrf.mxu2  ;;  %1347 = vmatmul.bf16.vlgmr.msrb.gmra.mxu0 %v933_v1  ;;  %v1000_v62 = vld [vmem:[%s5231_s9] sm:$0x3]  ;;  %v3440_v3 = vld [vmem:[%s5230_s14 + $0x18] sm:$0xff] }
 0x2bb   :  { %v925_v6 = vadd.f32 %v924_v5, %v711_v0  ;;  %1360 = vmatmul.bf16.vlgmr.msra.gmra.mxu1 %v934_v2  ;;  %v900_v7 = vpop.f32.mrf.mxu0  ;;  %1831 = vmatpush.bf16.msrb.mxu0 %v3444_v52  ;;  %v1003_v26 = vperm.slane %v1000_v62, 1 }
 0x2bc   :  { %v928_v8 = vmax.f32 %v886_v4, 0.0  ;;  %v913_v9 = vpop.f32.mrf.mxu1  ;;  %3445 = vmatpush.bf16.msra.mxu1 %v3444_v52  ;;  %v3439_v7 = vld [vmem:[%s5230_s14 + $0x10] sm:$0xff] }
 0x2bd   :  { %v931_v10 = vmax.f32 %v925_v6, 0.0  ;;  %v1533_v9 = vpop.permute.xlu1 %1532 }
 0x2be   :  { %v932_v41 = vpack.c.bf16 %v928_v8, %v928_v8  ;;  %v1536_v8 = vpop.permute.xlu2 %1535  ;;  %vm1551_vm6 = vcmp.eq.s32.totalorder %v1533_v9, %v4474_v19 }
 0x2bf   :  { %v935_v12 = vpack.c.bf16 %v931_v10, %v931_v10  ;;  %1832 = vmatpush.bf16.msrb.mxu0 %v3443_v53  ;;  %vm1552_vm5 = vcmp.eq.s32.totalorder %v1536_v8, %v4474_v19  ;;  %v3437_v19 = vld [vmem:[%s5230_s14] sm:$0xff] }
 0x2c0   :  { %1334 = vmatmul.bf16.vlgmr.msrb.gmra.mxu3 %v932_v41  ;;  %3446 = vmatpush.bf16.msra.mxu1 %v3443_v53 }
 0x2c1   :  { %1373 = vmatmul.bf16.vlgmr.msrb.gmra.mxu2 %v935_v12  ;;  %v887_v13 = vpop.f32.mrf.mxu3  ;;  %1670 = vmatpush.bf16.msrb.mxu3 %v3436_v11 }
 0x2c2   :  { %v926_v15 = vpop.f32.mrf.mxu2  ;;  %v3438_v13 = vld [vmem:[%s5230_s14 + $0x8] sm:$0xff] }
 0x2c3   :  { %1833 = vmatpush.bf16.msrb.mxu0 %v3442_v58  ;;  %v3224_v15 = vsel %vm1552_vm5, 1.0, %v3551_v22 }
 0x2c4   :  { %3447 = vmatpush.bf16.msra.mxu1 %v3442_v58  ;;  %v1603_v58 = vld [vmem:[%s5232_s13 + $0x10] sm:$0xff] }
 0x2c5   :  { %1671 = vmatpush.bf16.msrb.mxu3 %v3435_v14 }
 0x2c7   :  { %1834 = vmatpush.bf16.msrb.mxu0 %v3441_v61 }
 0x2c8   :  { %3448 = vmatpush.bf16.msra.mxu1 %v3441_v61 }
 0x2c9   :  { %1672 = vmatpush.bf16.msrb.mxu3 %v3434_v16  ;;  %v3223_v16 = vsel %vm1551_vm6, 1.0, %v3551_v22 }
 0x2ca   :  { %1399 = vmatmul.bf16.vlgmr.msra.gmra.mxu0 %v933_v1  ;;  %v1592_v23 = vpack.c.bf16 %v3224_v15, %v3223_v16  ;;  %v1605_v16 = vld [vmem:[%s5232_s13 + $0x20] sm:$0xff] }
 0x2cb   :  { %1412 = vmatmul.bf16.vlgmr.msrb.gmra.mxu1 %v934_v2  ;;  %v1002_v2 = vperm.slane %v1000_v62, 0  ;;  %1835 = vmatpush.bf16.msrb.mxu0 %v3440_v3 }
 0x2cc   :  { %3449 = vmatpush.bf16.msra.mxu1 %v3440_v3 }
 0x2cd   :  { %1673 = vmatpush.bf16.msrb.mxu3 %v3433_v17 }
 0x2cf   :  { %1836 = vmatpush.bf16.msrb.mxu0 %v3439_v7 }
 0x2d0   :  { %1386 = vmatmul.bf16.vlgmr.msra.gmra.mxu3 %v932_v41  ;;  %3450 = vmatpush.bf16.msra.mxu1 %v3439_v7 }
 0x2d1   :  { %1425 = vmatmul.bf16.vlgmr.msra.gmra.mxu2 %v935_v12 }
 0x2d3   :  { %1837 = vmatpush.bf16.msrb.mxu0 %v3438_v13 }
 0x2d4   :  { %3451 = vmatpush.bf16.msra.mxu1 %v3438_v13  ;;  %v2090_v13 = vperm.slane %v4561_v48, 5 }
 0x2d6   :  { %2095 = vperm.xlu0 %3458, %v2090_v13  }
 0x2d7   :  { %1838 = vmatpush.bf16.msrb.mxu0 %v3437_v19 }
 0x2d8   :  { %3452 = vmatpush.bf16.msra.mxu1 %v3437_v19 }
 0x2e0   :  { %3241 = vmatmul.msk.bf16.vlgmr.msrb.gmra.mxu3 %vm1641_vm8, %v1585_v25 }
 0x2f0   :  { %3242 = vmatmul.msk.bf16.gmra.mxu3 %vm1641_vm8, %v1586_v30 }
 0x300   :  { %3243 = vmatmul.msk.bf16.gmra.mxu3 %vm1641_vm8, %v1587_v35 }
 0x310   :  { %3244 = vmatmul.msk.bf16.gmra.mxu3 %vm1641_vm8, %v1588_v40  ;;  %v4550_v40 = vadd.s32 8, %v4544_v37 }
 0x312   :  { %3459 = vset.pattern.permute.xlu1 %v4550_v40  ;;  %3463 = vset.pattern.permute.xlu0 %v4550_v40 }
 0x31a   :  { %2036 = vperm.xlu1 %3459, %v2025_v49   ;;  %v1612_v49 = vld [vmem:[%s5232_s13 + $0x58] sm:$0xff] }
 0x320   :  { %3245 = vmatmul.msk.bf16.gmra.mxu3 %vm1641_vm8, %v1589_v46 }
 0x330   :  { %3246 = vmatmul.msk.bf16.gmra.mxu3 %vm1641_vm8, %v1590_v51 }
 0x337   :  { %v1348_v56 = vpop.f32.mrf.mxu0 }
 0x338   :  { %v1361_v57 = vpop.f32.mrf.mxu1 }
 0x33f   :  { %v1350_v0 = vpop.f32.mrf.mxu0 }
 0x340   :  { %v1363_v1 = vpop.f32.mrf.mxu1  ;;  %3247 = vmatmul.msk.bf16.gmra.mxu3 %vm1641_vm8, %v1591_v63 }
 0x343   :  { %v1335_v4 = vpop.f32.mrf.mxu3 }
 0x344   :  { %v1336_v5 = vadd.f32 %v1335_v4, %v1002_v2  ;;  %v1374_v6 = vpop.f32.mrf.mxu2 }
 0x346   :  { %v1349_v10 = vadd.f32 %v1348_v56, %v1336_v5 }
 0x347   :  { %v1400_v11 = vpop.f32.mrf.mxu0 }
 0x348   :  { %v1362_v41 = vadd.f32 %v1361_v57, %v1349_v10  ;;  %v1413_v12 = vpop.f32.mrf.mxu1  ;;  %v1604_v10 = vld [vmem:[%s5232_s13 + $0x18] sm:$0xff] }
 0x34a   :  { %v1375_v14 = vadd.f32 %v1374_v6, %v1362_v41  ;;  %v2038_v41 = vperm.slane %v4561_v48, 1 }
 0x34b   :  { %v1337_v17 = vpop.f32.mrf.mxu3 }
 0x34c   :  { %v3207_v20 = vmul.f32 -1.442695, %v1375_v14  ;;  %v1376_v21 = vpop.f32.mrf.mxu2  ;;  %2049 = vperm.xlu1 %3459, %v2038_v41   ;;  %2043 = vperm.xlu2 %3460, %v2038_v41  }
 0x34d   :  { %v1606_v21 = vld [vmem:[%s5232_s13 + $0x28] sm:$0xff] }
 0x34e   :  { %3476 = vpow2.f32 %v3207_v20 }
 0x34f   :  { %v1402_v24 = vpop.f32.mrf.mxu0 }
 0x350   :  { %v1415_v25 = vpop.f32.mrf.mxu1  ;;  %3248 = vmatmul.msk.bf16.gmra.mxu3 %vm1641_vm8, %v1592_v23  ;;  %v2051_v23 = vperm.slane %v4561_v48, 2 }
 0x352   :  { %2062 = vperm.xlu0 %3463, %v2051_v23  }
 0x353   :  { %v1387_v27 = vpop.f32.mrf.mxu3 }
 0x354   :  { %v3477_v28 = vpop.eup %3476  ;;  %v1388_v29 = vadd.f32 %v1387_v27, %v1003_v26  ;;  %v1426_v22 = vpop.f32.mrf.mxu2  ;;  %3461 = vset.pattern.permute.xlu1 %v4544_v37  ;;  %2056 = vperm.xlu2 %3460, %v2051_v23   ;;  %v2064_v27 = vperm.slane %v4561_v48, 3 }
 0x355   :  { %v1436_v31 = vadd.f32 1.0, %v3477_v28  ;;  %v1607_v28 = vld [vmem:[%s5232_s13 + $0x30] sm:$0xff] }
 0x356   :  { %v1401_v30 = vadd.f32 %v1400_v11, %v1388_v29 }
 0x357   :  { %3478 = vrcp.f32 %v1436_v31  ;;  %vm1443_vm8 = vweird.f32 %v1436_v31  ;;  %v1449_v59 = vand.u32 2147483648, %v1436_v31  ;;  %v1447_v61 = vand.u32 2147483647, %v1436_v31 }
 0x358   :  { %v1414_v32 = vadd.f32 %v1413_v12, %v1401_v30  ;;  %v2077_v30 = vperm.slane %v4561_v48, 4 }
 0x359   :  { %v1450_v4 = vor.u32 1.1754944e-38, %v1449_v59  ;;  %vm1448_vm13 = vcmp.eq.f32.partialorder %v1447_v61, 8.507059e+37  ;;  %v1615_v61 = vld [vmem:[%s5232_s13 + $0x70] sm:$0xff] }
 0x35a   :  { %v1427_v33 = vadd.f32 %v1426_v22, %v1414_v32 }
 0x35b   :  { %v1389_v34 = vpop.f32.mrf.mxu3 }
 0x35c   :  { %v3208_v35 = vmul.f32 -1.442695, %v1427_v33  ;;  %v1428_v36 = vpop.f32.mrf.mxu2  ;;  %2069 = vperm.xlu1 %3461, %v2064_v27   ;;  %3462 = vset.pattern.permute.xlu2 %v4550_v40 }
 0x35d   :  { %v3479_v38 = vpop.eup %3478  ;;  %v1609_v36 = vld [vmem:[%s5232_s13 + $0x40] sm:$0xff] }
 0x35e   :  { %3480 = vpow2.f32 %v3208_v35  ;;  %v1439_v44 = vmul.f32 %v3479_v38, %v1436_v31  ;;  %vm1444_vm7 = vweird.f32 %v3479_v38  ;;  %v1608_v31 = vld [vmem:[%s5232_s13 + $0x38] sm:$0xff] }
 0x35f   :  { %vm1445_vm10 = vmor %vm1443_vm8, %vm1444_vm7 }
 0x360   :  { %v1440_v46 = vsub.f32 1.0, %v1439_v44 }
 0x362   :  { %v1441_v52 = vmul.f32 %v3479_v38, %v1440_v46 }
 0x363   :  { %v1675_v42 = vpop.f32.mrf.mxu3 }
 0x364   :  { %v3481_v43 = vpop.eup %3480  ;;  %v1676_v45 = vadd.f32 %v1675_v42, %v1601_v39  ;;  %v1442_v57 = vadd.f32 %v3479_v38, %v1441_v52  ;;  %2082 = vperm.xlu1 %3461, %v2077_v30   ;;  %2075 = vperm.xlu2 %3462, %v2064_v27   ;;  %v1610_v42 = vld [vmem:[%s5232_s13 + $0x48] sm:$0xff]  ;;  %v2116_v52 = vperm.slane %v4561_v48, 7 }
 0x365   :  { %v1437_v18 = vadd.f32 1.0, %v3481_v43 }
 0x366   :  { %v1446_v2 = vsel %vm1445_vm10, %v3479_v38, %v1442_v57  ;;  %2127 = vperm.xlu0 %3463, %v2116_v52  }
 0x367   :  { %3482 = vrcp.f32 %v1437_v18  ;;  %v1464_v60 = vand.u32 2147483648, %v1437_v18  ;;  %v1462_v63 = vand.u32 2147483647, %v1437_v18  ;;  %vm1458_vm11 = vweird.f32 %v1437_v18 }
 0x368   :  { %v4567_v7 = vsel %vm1448_vm13, %v1450_v4, %v1446_v2 }
 0x369   :  { %v1465_v5 = vor.u32 1.1754944e-38, %v1464_v60  ;;  %vm1463_vm14 = vcmp.eq.f32.partialorder %v1462_v63, 8.507059e+37 }
 0x36b   :  { %v1677_v50 = vpop.f32.mrf.mxu3 }
 0x36c   :  { %v1678_v51 = vadd.f32 %v1677_v50, %v1602_v47  ;;  %3464 = vset.pattern.permute.xlu1 %v4550_v40  ;;  %2088 = vperm.xlu2 %3462, %v2077_v30   ;;  %v1611_v40 = vld [vmem:[%s5232_s13 + $0x50] sm:$0xff] }
 0x36d   :  { %v3483_v53 = vpop.eup %3482 }
 0x36e   :  { %v1454_v54 = vmul.f32 %v3483_v53, %v1437_v18  ;;  %v1755_v55 = vpack.c.bf16 %v1678_v51, %v1676_v45  ;;  %vm1459_vm9 = vweird.f32 %v3483_v53  ;;  %v2103_v51 = vperm.slane %v4561_v48, 6 }
 0x36f   :  { %vm1460_vm12 = vmor %vm1458_vm11, %vm1459_vm9 }
 0x370   :  { %v1455_v56 = vsub.f32 1.0, %v1454_v54  ;;  %1839 = vmatmul.bf16.vlgmr.msrb.gmra.mxu0 %v1755_v55  ;;  %v1613_v55 = vld [vmem:[%s5232_s13 + $0x60] sm:$0xff] }
 0x372   :  { %v1456_v62 = vmul.f32 %v3483_v53, %v1455_v56 }
 0x373   :  { %v1680_v0 = vpop.f32.mrf.mxu3 }
 0x374   :  { %v1681_v1 = vadd.f32 %v1680_v0, %v1603_v58  ;;  %v1457_v3 = vadd.f32 %v3483_v53, %v1456_v62  ;;  %2101 = vperm.xlu1 %3464, %v2090_v13   ;;  %3465 = vset.pattern.permute.xlu2 %v4544_v37  ;;  %v1614_v58 = vld [vmem:[%s5232_s13 + $0x68] sm:$0xff]  ;;  %v1616_v0 = vld [vmem:[%s5232_s13 + $0x78] sm:$0xff] }
 0x376   :  { %v1461_v6 = vsel %vm1460_vm12, %v3483_v53, %v1457_v3 }
 0x377   :  { %v4569_v8 = vsel %vm1463_vm14, %v1465_v5, %v1461_v6  ;;  %v4637_v6 = vpop.permute.xlu0 %2030 }
 0x378   :  { %v1468_v9 = vadd.f32 %v4569_v8, %v4567_v7 }
 0x37a   :  { %v1469_v11 = vmul.f32 0.5, %v1468_v9 }
 0x37b   :  { %v1682_v12 = vpop.f32.mrf.mxu3 }
 0x37c   :  { %v1683_v14 = vadd.f32 %v1682_v12, %v1604_v10  ;;  %1470 = vst [vmem:[%s5235_s17] sm:$0xff] %v1469_v11  ;;  %2114 = vperm.xlu1 %3464, %v2103_v51   ;;  %2108 = vperm.xlu2 %3465, %v2103_v51  }
 0x37e   :  { %v1756_v15 = vpack.c.bf16 %v1683_v14, %v1681_v1 }
 0x380   :  { %1844 = vmatmul.bf16.gmra.mxu0 %v1756_v15 }
 0x383   :  { %v1685_v17 = vpop.f32.mrf.mxu3 }
 0x384   :  { %v1686_v20 = vadd.f32 %v1685_v17, %v1605_v16  ;;  %2121 = vperm.xlu2 %3465, %v2116_v52  }
 0x386   :  { %1719 = vst [vmem:[#allocation2 + $0x20] sm:$0xff] %v1686_v20 }
 0x387   :  { %1731 = vst [vmem:[#allocation2 + $0x21] sm:$0x1] %v4567_v7 }
 0x388   :  { %1733 = vst [vmem:[#allocation2 + $0x22] sm:$0x1] %v4569_v8 }
 0x38b   :  { %v1687_v19 = vpop.f32.mrf.mxu3 }
 0x38c   :  { %v1688_v24 = vadd.f32 %v1687_v19, %v1606_v21  ;;  %v4635_v5 = vpop.permute.xlu1 %2036  ;;  %v4658_v19 = vpop.permute.xlu0 %2095 }
 0x38d   :  { %v2201_v9 = vadd.f32 %v4635_v5, %v4637_v6 }
 0x38f   :  { %v1743_v25 = vld [vmem:[#allocation2 + $0x20] sm:$0xff]  ;;  %v2202_v14 = vrot.slane %v2201_v9, 4 }
 0x390   :  { %v1757_v26 = vpack.c.bf16 %v1688_v24, %v1743_v25 }
 0x391   :  { %v2203_v20 = vadd.f32 %v2202_v14, %v2201_v9 }
 0x392   :  { %1849 = vmatmul.bf16.gmra.mxu0 %v1757_v26 }
 0x393   :  { %v1690_v29 = vpop.f32.mrf.mxu3  ;;  %v2204_v25 = vrot.slane %v2203_v20, 2 }
 0x394   :  { %v1691_v22 = vadd.f32 %v1690_v29, %v1607_v28 }
 0x396   :  { %1721 = vst [vmem:[#allocation2 + $0x30] sm:$0xff] %v1691_v22  ;;  %v2205_v22 = vadd.f32 %v2204_v25, %v2203_v20 }
 0x397   :  { %1735 = vst [vmem:[#allocation2 + $0x30] sm:$0x2] %v4567_v7 }
 0x398   :  { %1737 = vst [vmem:[#allocation2 + $0x31] sm:$0x2] %v4569_v8 }
 0x39b   :  { %v1692_v32 = vpop.f32.mrf.mxu3 }
 0x39c   :  { %v1693_v33 = vadd.f32 %v1692_v32, %v1608_v31 }
 0x39f   :  { %v1745_v34 = vld [vmem:[#allocation2 + $0x30] sm:$0xff] }
 0x3a0   :  { %v1758_v35 = vpack.c.bf16 %v1693_v33, %v1745_v34  ;;  %v2206_v33 = vrot.slane %v2205_v22, 1 }
 0x3a2   :  { %1854 = vmatmul.bf16.vlgmr.msra.gmra.mxu1 %v1758_v35 }
 0x3a3   :  { %v1695_v38 = vpop.f32.mrf.mxu3 }
 0x3a4   :  { %v1696_v39 = vadd.f32 %v1695_v38, %v1609_v36 }
 0x3a6   :  { %1723 = vst [vmem:[#allocation2 + $0x40] sm:$0xff] %v1696_v39  ;;  %v4646_v10 = vpop.permute.xlu2 %2043 }
 0x3a7   :  { %1732 = vst [vmem:[#allocation2 + $0x3f] sm:$0x4] %v4567_v7 }
 0x3a8   :  { %1734 = vst [vmem:[#allocation2 + $0x40] sm:$0x4] %v4569_v8 }
 0x3ab   :  { %v1697_v43 = vpop.f32.mrf.mxu3 }
 0x3ac   :  { %v1698_v44 = vadd.f32 %v1697_v43, %v1610_v42 }
 0x3ae   :  { %v4662_v34 = vpop.permute.xlu2 %2056 }
 0x3af   :  { %v1747_v45 = vld [vmem:[#allocation2 + $0x40] sm:$0xff] }
 0x3b0   :  { %v1759_v18 = vpack.c.bf16 %v1698_v44, %v1747_v45  ;;  %v2207_v45 = vadd.f32 %v2206_v33, %v2205_v22 }
 0x3b2   :  { %1859 = vmatmul.bf16.gmra.mxu1 %v1759_v18 }
 0x3b3   :  { %v1700_v46 = vpop.f32.mrf.mxu3 }
 0x3b4   :  { %v1701_v47 = vadd.f32 %v1700_v46, %v1611_v40 }
 0x3b6   :  { %1725 = vst [vmem:[#allocation2 + $0x50] sm:$0xff] %v1701_v47 }
 0x3b7   :  { %1736 = vst [vmem:[#allocation2 + $0x4e] sm:$0x8] %v4567_v7 }
 0x3b8   :  { %1738 = vst [vmem:[#allocation2 + $0x4f] sm:$0x8] %v4569_v8  ;;  %v4642_v8 = vld [vmem:[%s5233_s15] ss:$0 sm:$0xff] }
 0x3bb   :  { %v1702_v50 = vpop.f32.mrf.mxu3 }
 0x3bc   :  { %v1703_v37 = vadd.f32 %v1702_v50, %v1612_v49  ;;  %v4675_v49 = vmax.f32 %v2207_v45, 0.0001 }
 0x3be   :  { %v4648_v11 = vpop.permute.xlu1 %2049  ;;  %vm2270_vm15 = vweird.f32 %v4675_v49 }
 0x3bf   :  { %v1749_v53 = vld [vmem:[#allocation2 + $0x50] sm:$0xff]  ;;  %v2208_v13 = vadd.f32 %v4648_v11, %v4646_v10 }
 0x3c0   :  { %v1760_v54 = vpack.c.bf16 %v1703_v37, %v1749_v53 }
 0x3c1   :  { %v2209_v17 = vrot.slane %v2208_v13, 4 }
 0x3c2   :  { %1864 = vmatmul.bf16.gmra.mxu1 %v1760_v54 }
 0x3c3   :  { %v1705_v56 = vpop.f32.mrf.mxu3  ;;  %v2210_v24 = vadd.f32 %v2209_v17, %v2208_v13 }
 0x3c4   :  { %v1706_v57 = vadd.f32 %v1705_v56, %v1613_v55  ;;  %v4664_v35 = vpop.permute.xlu0 %2062 }
 0x3c5   :  { %v2211_v29 = vrot.slane %v2210_v24, 2  ;;  %v2215_v43 = vadd.f32 %v4664_v35, %v4662_v34 }
 0x3c7   :  { %v2212_v32 = vadd.f32 %v2211_v29, %v2210_v24  ;;  %v2216_v46 = vrot.slane %v2215_v43, 4 }
 0x3c9   :  { %v2213_v42 = vrot.slane %v2212_v32, 1  ;;  %v2217_v52 = vadd.f32 %v2216_v46, %v2215_v43 }
 0x3cb   :  { %v1707_v59 = vpop.f32.mrf.mxu3  ;;  %v2214_v40 = vadd.f32 %v2213_v42, %v2212_v32  ;;  %v2276_v42 = vand.u32 2147483648, %v4675_v49 }
 0x3cc   :  { %v1708_v60 = vadd.f32 %v1707_v59, %v1614_v58  ;;  %v2218_v59 = vrot.slane %v2217_v52, 2 }
 0x3cd   :  { %v4680_v51 = vmax.f32 %v2214_v40, 0.0001 }
 0x3ce   :  { %v1761_v48 = vpack.c.bf16 %v1708_v60, %v1706_v57 }
 0x3cf   :  { %vm2285_vm1 = vweird.f32 %v4680_v51 }
 0x3d2   :  { %1869 = vmatmul.bf16.gmra.mxu1 %v1761_v48 }
 0x3d3   :  { %v1710_v62 = vpop.f32.mrf.mxu3 }
 0x3d4   :  { %v1711_v63 = vadd.f32 %v1710_v62, %v1615_v61 }
 0x3db   :  { %v1712_v1 = vpop.f32.mrf.mxu3 }
 0x3dc   :  { %v1713_v2 = vadd.f32 %v1712_v1, %v1616_v0  ;;  %v2219_v0 = vadd.f32 %v2218_v59, %v2217_v52  ;;  %v2274_v52 = vand.u32 2147483647, %v4675_v49 }
 0x3de   :  { %v1762_v3 = vpack.c.bf16 %v1713_v2, %v1711_v63  ;;  %vm4766_vm5 = vcmp.eq.f32.partialorder %v2274_v52, 8.507059e+37 }
 0x3e2   :  { %1874 = vmatmul.bf16.gmra.mxu1 %v1762_v3 }
 0x3ed   :  { %v1840_v4 = vpop.f32.mrf.mxu0 }
 0x3ee   :  { %v4652_v12 = vadd.f32 %v4642_v8, %v1840_v4 }
 0x3f0   :  { %v1880_v16 = vmul.f32 %v4652_v12, %v4652_v12 }
 0x3f2   :  { %v1896_v23 = vmul.f32 %v1880_v16, %v4652_v12  ;;  %v4695_v16 = vpop.permute.xlu1 %2069 }
 0x3f4   :  { %v1912_v28 = vmul.f32 0.044715, %v1896_v23 }
 0x3f5   :  { %v1842_v7 = vpop.f32.mrf.mxu0 }
 0x3f6   :  { %v1843_v41 = vadd.f32 %v4642_v8, %v1842_v7  ;;  %v1928_v31 = vadd.f32 %v1912_v28, %v4652_v12 }
 0x3f8   :  { %v1881_v15 = vmul.f32 %v1843_v41, %v1843_v41  ;;  %v1944_v38 = vmul.f32 0.7978846, %v1928_v31 }
 0x3fa   :  { %v1897_v21 = vmul.f32 %v1881_v15, %v1843_v41  ;;  %v2220_v15 = vrot.slane %v2219_v0, 1  ;;  %v4726_v43 = vpop.permute.xlu1 %2082 }
 0x3fc   :  { %v1913_v26 = vmul.f32 0.044715, %v1897_v21 }
 0x3fd   :  { %v1845_v27 = vpop.f32.mrf.mxu0 }
 0x3fe   :  { %v1929_v30 = vadd.f32 %v1913_v26, %v1843_v41  ;;  %v4669_v44 = vadd.f32 %v4642_v8, %v1845_v27  ;;  %v2221_v27 = vadd.f32 %v2220_v15, %v2219_v0 }
 0x400   :  { %v1945_v36 = vmul.f32 0.7978846, %v1929_v30  ;;  %v1882_v47 = vmul.f32 %v4669_v44, %v4669_v44  ;;  %v4710_v30 = vpop.permute.xlu2 %2075 }
 0x402   :  { %3484 = vtanh.f32 %v1945_v36  ;;  %v1898_v53 = vmul.f32 %v1882_v47, %v4669_v44 }
 0x403   :  { %3486 = vtanh.f32 %v1944_v38  ;;  %v2222_v38 = vadd.f32 %v4710_v30, %v4695_v16 }
 0x404   :  { %3488 = vrcp.f32 %v4675_v49  ;;  %v1914_v60 = vmul.f32 0.044715, %v1898_v53 }
 0x405   :  { %v1847_v39 = vpop.f32.mrf.mxu0  ;;  %3490 = vrcp.f32 %v4680_v51 }
 0x406   :  { %v4678_v50 = vadd.f32 %v4642_v8, %v1847_v39  ;;  %v1930_v1 = vadd.f32 %v1914_v60, %v4669_v44 }
 0x408   :  { %v3485_v37 = vpop.eup %3484  ;;  %v1883_v54 = vmul.f32 %v4678_v50, %v4678_v50  ;;  %v1946_v21 = vmul.f32 0.7978846, %v1930_v1 }
 0x409   :  { %v3487_v55 = vpop.eup %3486  ;;  %v1977_v57 = vadd.f32 1.0, %v3485_v37 }
 0x40a   :  { %v1976_v48 = vadd.f32 1.0, %v3487_v55  ;;  %v1899_v61 = vmul.f32 %v1883_v54, %v4678_v50  ;;  %v4688_v62 = vpop.eup %3488  ;;  %3492 = vtanh.f32 %v1946_v21 }
 0x40b   :  { %v1993_v63 = vmul.f32 0.5, %v1977_v57  ;;  %v4691_v4 = vpop.eup %3490  ;;  %v2266_v7 = vmul.f32 %v4688_v62, %v4675_v49  ;;  %vm2271_vm0 = vweird.f32 %v4688_v62  ;;  %v2223_v57 = vrot.slane %v2222_v38, 4 }
 0x40c   :  { %v1992_v2 = vmul.f32 0.5, %v1976_v48  ;;  %v1915_v3 = vmul.f32 0.044715, %v1899_v61  ;;  %v2281_v23 = vmul.f32 %v4691_v4, %v4680_v51  ;;  %vm4728_vm2 = vmor %vm2270_vm15, %vm2271_vm0  ;;  %vm2286_vm3 = vweird.f32 %v4691_v4  ;;  %v4759_v61 = vpop.permute.xlu2 %2088 }
 0x40d   :  { %v2009_v9 = vmul.f32 %v1993_v63, %v1843_v41  ;;  %v2267_v24 = vsub.f32 1.0, %v2266_v7  ;;  %v2277_v49 = vor.u32 1.1754944e-38, %v2276_v42  ;;  %vm4754_vm4 = vmor %vm2285_vm1, %vm2286_vm3 }
 0x40e   :  { %v2008_v17 = vmul.f32 %v1992_v2, %v4652_v12  ;;  %v1931_v20 = vadd.f32 %v1915_v3, %v4678_v50  ;;  %v2282_v29 = vsub.f32 1.0, %v2281_v23 }
 0x40f   :  { %v1850_v56 = vpop.f32.mrf.mxu0  ;;  %v2130_v25 = vmul.f32 %v4635_v5, %v2009_v9  ;;  %v2268_v22 = vmul.f32 %v4688_v62, %v2267_v24 }
 0x410   :  { %v4706_v41 = vadd.f32 %v4642_v8, %v1850_v56  ;;  %v2129_v28 = vmul.f32 %v4637_v6, %v2008_v17  ;;  %v1947_v12 = vmul.f32 0.7978846, %v1931_v20  ;;  %v4718_v6 = vmax.f32 %v2221_v27, 0.0001  ;;  %v3493_v45 = vpop.eup %3492 }
 0x411   :  { %v2283_v36 = vmul.f32 %v4691_v4, %v2282_v29  ;;  %v2269_v39 = vadd.f32 %v4688_v62, %v2268_v22  ;;  %v2291_v56 = vand.u32 2147483648, %v4680_v51  ;;  %v1978_v60 = vadd.f32 1.0, %v3493_v45 }
 0x412   :  { %v2145_v31 = vadd.f32 %v2130_v25, %v2129_v28  ;;  %v1884_v33 = vmul.f32 %v4706_v41, %v4706_v41  ;;  %3494 = vtanh.f32 %v1947_v12  ;;  %v2224_v20 = vadd.f32 %v2223_v57, %v2222_v38 }
 0x413   :  { %3496 = vrcp.f32 %v4718_v6  ;;  %v2284_v55 = vadd.f32 %v4691_v4, %v2283_v36  ;;  %v2292_v17 = vor.u32 1.1754944e-38, %v2291_v56  ;;  %v1994_v23 = vmul.f32 0.5, %v1978_v60 }
 0x414   :  { %v2146_v40 = vrot.slane %v2145_v31, 4  ;;  %v1900_v53 = vmul.f32 %v1884_v33, %v4706_v41  ;;  %v2229_v27 = vadd.f32 %v4759_v61, %v4726_v43  ;;  %v2225_v38 = vrot.slane %v2224_v20, 2 }
 0x415   :  { %v2288_v15 = vsel %vm4754_vm4, %v4691_v4, %v2284_v55  ;;  %v2010_v42 = vmul.f32 %v1994_v23, %v4669_v44  ;;  %vm2300_vm7 = vweird.f32 %v4718_v6 }
 0x416   :  { %v2147_v0 = vadd.f32 %v2146_v40, %v2145_v31  ;;  %v1916_v9 = vmul.f32 0.044715, %v1900_v53  ;;  %v2230_v46 = vrot.slane %v2229_v27, 4 }
 0x417   :  { %v1852_v14 = vpop.f32.mrf.mxu0 }
 0x418   :  { %v4703_v26 = vadd.f32 %v4642_v8, %v1852_v14  ;;  %v3495_v63 = vpop.eup %3494  ;;  %v2148_v28 = vrot.slane %v2147_v0, 2  ;;  %v1932_v22 = vadd.f32 %v1916_v9, %v4706_v41 }
 0x419   :  { %v4780_v21 = vpop.eup %3496  ;;  %v1979_v24 = vadd.f32 1.0, %v3495_v63 }
 0x41a   :  { %v1885_v5 = vmul.f32 %v4703_v26, %v4703_v26  ;;  %v2296_v36 = vmul.f32 %v4780_v21, %v4718_v6  ;;  %v2149_v52 = vadd.f32 %v2148_v28, %v2147_v0  ;;  %v2131_v0 = vmul.f32 %v4646_v10, %v2010_v42 }
 0x41b   :  { %v1995_v45 = vmul.f32 0.5, %v1979_v24  ;;  %v2306_v28 = vand.u32 2147483648, %v4718_v6  ;;  %vm2301_vm8 = vweird.f32 %v4780_v21 }
 0x41c   :  { %v1901_v47 = vmul.f32 %v1885_v5, %v4703_v26  ;;  %v4794_v5 = vpop.permute.xlu1 %2101  ;;  %v2297_v48 = vsub.f32 1.0, %v2296_v36  ;;  %v2150_v9 = vrot.slane %v2149_v52, 1  ;;  %vm4862_vm9 = vmor %vm2300_vm7, %vm2301_vm8 }
 0x41e   :  { %v1917_v1 = vmul.f32 0.044715, %v1901_v47  ;;  %v4810_v47 = vpop.permute.xlu2 %2108  ;;  %v2298_v10 = vmul.f32 %v4780_v21, %v2297_v48 }
 0x41f   :  { %v4671_v18 = vpop.f32.mrf.mxu1 }
 0x420   :  { %v4736_v37 = vadd.f32 %v4642_v8, %v4671_v18  ;;  %v2273_v18 = vsel %vm4728_vm2, %v4688_v62, %v2269_v39  ;;  %v1933_v12 = vadd.f32 %v1917_v1, %v4703_v26  ;;  %v2236_v1 = vadd.f32 %v4794_v5, %v4658_v19 }
 0x421   :  { %v4800_v33 = vsel %vm4766_vm5, %v2277_v49, %v2273_v18  ;;  %v1948_v18 = vmul.f32 0.7978846, %v1932_v22 }
 0x422   :  { %v1886_v2 = vmul.f32 %v4736_v37, %v4736_v37  ;;  %v1949_v55 = vmul.f32 0.7978846, %v1933_v12  ;;  %v2237_v25 = vrot.slane %v2236_v1, 4 }
 0x424   :  { %v1902_v4 = vmul.f32 %v1886_v2, %v4736_v37  ;;  %v2011_v2 = vmul.f32 %v1995_v45, %v4678_v50  ;;  %3498 = vtanh.f32 %v1949_v55  ;;  %v4826_v23 = vpop.permute.xlu1 %2114  ;;  %v2238_v55 = vadd.f32 %v2237_v25, %v2236_v1 }
 0x425   :  { %3500 = vtanh.f32 %v1948_v18  ;;  %v2243_v36 = vadd.f32 %v4826_v23, %v4810_v47 }
 0x426   :  { %v1918_v53 = vmul.f32 0.044715, %v1902_v4 }
 0x427   :  { %v1857_v58 = vpop.f32.mrf.mxu1 }
 0x428   :  { %v4742_v54 = vadd.f32 %v4642_v8, %v1857_v58  ;;  %v2289_v58 = vand.u32 2147483647, %v4680_v51 }
 0x42a   :  { %v1887_v51 = vmul.f32 %v4742_v54, %v4742_v54  ;;  %vm4782_vm6 = vcmp.eq.f32.partialorder %v2289_v58, 8.507059e+37  ;;  %v2226_v58 = vadd.f32 %v2225_v38, %v2224_v20 }
 0x42b   :  { %v4808_v40 = vsel %vm4782_vm6, %v2292_v17, %v2288_v15 }
 0x42c   :  { %v1903_v31 = vmul.f32 %v1887_v51, %v4742_v54  ;;  %v1934_v51 = vadd.f32 %v1918_v53, %v4736_v37  ;;  %v2227_v50 = vrot.slane %v2226_v58, 1 }
 0x42e   :  { %v1919_v49 = vmul.f32 0.044715, %v1903_v31  ;;  %v1950_v22 = vmul.f32 0.7978846, %v1934_v51  ;;  %v2228_v1 = vadd.f32 %v2227_v50, %v2226_v58 }
 0x42f   :  { %v1860_v13 = vpop.f32.mrf.mxu1 }
 0x430   :  { %v4764_v62 = vadd.f32 %v4642_v8, %v1860_v13  ;;  %v1935_v17 = vadd.f32 %v1919_v49, %v4742_v54  ;;  %3502 = vtanh.f32 %v1950_v22 }
 0x432   :  { %v1888_v29 = vmul.f32 %v4764_v62, %v4764_v62  ;;  %v1951_v38 = vmul.f32 0.7978846, %v1935_v17  ;;  %v4852_v17 = vadd.f32 %v4780_v21, %v2298_v10 }
 0x434   :  { %v1904_v56 = vmul.f32 %v1888_v29, %v4764_v62  ;;  %v2151_v29 = vadd.f32 %v2150_v9, %v2149_v52  ;;  %v3499_v52 = vpop.eup %3498  ;;  %3504 = vtanh.f32 %v1951_v38 }
 0x436   :  { %v1920_v15 = vmul.f32 0.044715, %v1904_v56  ;;  %v3501_v56 = vpop.eup %3500 }
 0x437   :  { %v1862_v32 = vpop.f32.mrf.mxu1  ;;  %v3503_v58 = vpop.eup %3502 }
 0x438   :  { %v4747_v59 = vadd.f32 %v4642_v8, %v1862_v32  ;;  %v1936_v31 = vadd.f32 %v1920_v15, %v4764_v62  ;;  %v1980_v15 = vadd.f32 1.0, %v3501_v56 }
 0x43a   :  { %v1889_v13 = vmul.f32 %v4747_v59, %v4747_v59  ;;  %v1952_v48 = vmul.f32 0.7978846, %v1936_v31  ;;  %v1996_v50 = vmul.f32 0.5, %v1980_v15  ;;  %v2304_v31 = vand.u32 2147483647, %v4718_v6  ;;  %v3505_v38 = vpop.eup %3504 }
 0x43c   :  { %v1905_v39 = vmul.f32 %v1889_v13, %v4747_v59  ;;  %vm4898_vm10 = vcmp.eq.f32.partialorder %v2304_v31, 8.507059e+37 }
 0x43e   :  { %v1921_v63 = vmul.f32 0.044715, %v1905_v39 }
 0x43f   :  { %v1865_v3 = vpop.f32.mrf.mxu1 }
 0x440   :  { %v4773_v14 = vadd.f32 %v4642_v8, %v1865_v3  ;;  %v2231_v3 = vadd.f32 %v2230_v46, %v2229_v27  ;;  %v1937_v24 = vadd.f32 %v1921_v63, %v4747_v59  ;;  %v2132_v27 = vmul.f32 %v4648_v11, %v2011_v2  ;;  %v4840_v11 = vpop.permute.xlu2 %2121  ;;  %v4842_v46 = vpop.permute.xlu0 %2127 }
 0x441   :  { %v2244_v63 = vrot.slane %v2243_v36, 4  ;;  %v2250_v2 = vadd.f32 %v4842_v46, %v4840_v11 }
 0x442   :  { %v1890_v32 = vmul.f32 %v4773_v14, %v4773_v14  ;;  %v2232_v12 = vrot.slane %v2231_v3, 2  ;;  %v1953_v53 = vmul.f32 0.7978846, %v1937_v24 }
 0x443   :  { %v2245_v24 = vadd.f32 %v2244_v63, %v2243_v36  ;;  %v2251_v25 = vrot.slane %v2250_v2, 4 }
 0x444   :  { %v1906_v60 = vmul.f32 %v1890_v32, %v4773_v14  ;;  %v2233_v18 = vadd.f32 %v2232_v12, %v2231_v3  ;;  %3506 = vtanh.f32 %v1953_v53 }
 0x445   :  { %v2252_v63 = vadd.f32 %v2251_v25, %v2250_v2  ;;  %v1982_v2 = vadd.f32 1.0, %v3503_v58 }
 0x446   :  { %v1922_v20 = vmul.f32 0.044715, %v1906_v60 }
 0x447   :  { %v1867_v57 = vpop.f32.mrf.mxu1 }
 0x448   :  { %v4815_v44 = vadd.f32 %v4642_v8, %v1867_v57  ;;  %v1938_v39 = vadd.f32 %v1922_v20, %v4773_v14  ;;  %v2152_v57 = vadd.f32 %v2132_v27, %v2131_v0  ;;  %v2239_v0 = vrot.slane %v2238_v55, 2 }
 0x44a   :  { %v1891_v7 = vmul.f32 %v4815_v44, %v4815_v44  ;;  %v1954_v9 = vmul.f32 0.7978846, %v1938_v39  ;;  %v2153_v3 = vrot.slane %v2152_v57, 4  ;;  %v2240_v36 = vadd.f32 %v2239_v0, %v2238_v55  ;;  %v3507_v56 = vpop.eup %3506 }
 0x44b   :  { %v1985_v15 = vadd.f32 1.0, %v3507_v56 }
 0x44c   :  { %v1907_v13 = vmul.f32 %v1891_v7, %v4815_v44  ;;  %v1981_v7 = vadd.f32 1.0, %v3499_v52  ;;  %v2154_v39 = vadd.f32 %v2153_v3, %v2152_v57 }
 0x44d   :  { %v2001_v56 = vmul.f32 0.5, %v1985_v15 }
 0x44e   :  { %v1923_v4 = vmul.f32 0.044715, %v1907_v13  ;;  %v2234_v13 = vrot.slane %v2233_v18, 1  ;;  %v1997_v12 = vmul.f32 0.5, %v1981_v7 }
 0x44f   :  { %v1870_v32 = vpop.f32.mrf.mxu1 }
 0x450   :  { %v1939_v42 = vadd.f32 %v1923_v4, %v4815_v44  ;;  %v4838_v45 = vadd.f32 %v4642_v8, %v1870_v32  ;;  %v4867_v32 = vmax.f32 %v2228_v1, 0.0001  ;;  %v2013_v6 = vmul.f32 %v1997_v12, %v4703_v26 }
 0x452   :  { %v1955_v49 = vmul.f32 0.7978846, %v1939_v42  ;;  %v1892_v60 = vmul.f32 %v4838_v45, %v4838_v45  ;;  %v4869_v42 = vor.u32 1.1754944e-38, %v2306_v28  ;;  %v2303_v28 = vsel %vm4862_vm9, %v4780_v21, %v4852_v17 }
 0x453   :  { %v2134_v25 = vmul.f32 %v4664_v35, %v2013_v6  ;;  %vm2315_vm11 = vweird.f32 %v4867_v32 }
 0x454   :  { %v1908_v51 = vmul.f32 %v1892_v60, %v4838_v45  ;;  %3508 = vtanh.f32 %v1955_v49  ;;  %v4874_v49 = vmul.f32 %v4800_v33, %v2151_v29  ;;  %v2235_v60 = vadd.f32 %v2234_v13, %v2233_v18 }
 0x455   :  { %3510 = vtanh.f32 %v1952_v48  ;;  %v2246_v48 = vrot.slane %v2245_v24, 2  ;;  %v2241_v33 = vrot.slane %v2240_v36, 1  ;;  %v2155_v18 = vrot.slane %v2154_v39, 2 }
 0x456   :  { %v1924_v20 = vmul.f32 0.044715, %v1908_v51  ;;  %3512 = vtanh.f32 %v1954_v9  ;;  %v2012_v9 = vmul.f32 %v1996_v50, %v4706_v41  ;;  %v1983_v51 = vadd.f32 1.0, %v3505_v38 }
 0x457   :  { %v1872_v27 = vpop.f32.mrf.mxu1  ;;  %v4884_v1 = vmax.f32 %v2235_v60, 0.0001  ;;  %v2247_v3 = vadd.f32 %v2246_v48, %v2245_v24  ;;  %v2242_v58 = vadd.f32 %v2241_v33, %v2240_v36 }
 0x458   :  { %v1940_v4 = vadd.f32 %v1924_v20, %v4838_v45  ;;  %v4856_v22 = vadd.f32 %v4642_v8, %v1872_v27  ;;  %v2253_v20 = vrot.slane %v2252_v63, 2  ;;  %v1999_v50 = vmul.f32 0.5, %v1983_v51 }
 0x459   :  { %v4903_v51 = vmax.f32 %v2242_v58, 0.0001  ;;  %vm2330_vm13 = vweird.f32 %v4884_v1 }
 0x45a   :  { %v1956_v52 = vmul.f32 0.7978846, %v1940_v4  ;;  %v1893_v53 = vmul.f32 %v4856_v22, %v4856_v22  ;;  %v3509_v7 = vpop.eup %3508  ;;  %v2133_v4 = vmul.f32 %v4662_v34, %v2012_v9  ;;  %v2254_v6 = vadd.f32 %v2253_v20, %v2252_v63 }
 0x45b   :  { %v3511_v57 = vpop.eup %3510  ;;  %v1987_v0 = vadd.f32 1.0, %v3509_v7  ;;  %v2248_v7 = vrot.slane %v2247_v3, 1  ;;  %v2015_v9 = vmul.f32 %v1999_v50, %v4742_v54  ;;  %v2017_v63 = vmul.f32 %v2001_v56, %v4747_v59 }
 0x45c   :  { %3514 = vtanh.f32 %v1956_v52  ;;  %v1909_v55 = vmul.f32 %v1893_v53, %v4856_v22  ;;  %v3513_v29 = vpop.eup %3512  ;;  %v1984_v27 = vadd.f32 1.0, %v3511_v57  ;;  %v1998_v53 = vmul.f32 0.5, %v1982_v2 }
 0x45d   :  { %3516 = vrcp.f32 %v4867_v32  ;;  %v1986_v38 = vadd.f32 1.0, %v3513_v29  ;;  %v2003_v35 = vmul.f32 0.5, %v1987_v0  ;;  %v2156_v2 = vadd.f32 %v2155_v18, %v2154_v39 }
 0x45e   :  { %v1925_v26 = vmul.f32 0.044715, %v1909_v55  ;;  %3518 = vrcp.f32 %v4884_v1  ;;  %v2159_v55 = vadd.f32 %v2134_v25, %v2133_v4  ;;  %v2000_v57 = vmul.f32 0.5, %v1984_v27 }
 0x45f   :  { %v1875_v13 = vpop.f32.mrf.mxu1  ;;  %v2002_v33 = vmul.f32 0.5, %v1986_v38  ;;  %v2014_v15 = vmul.f32 %v1998_v53, %v4736_v37  ;;  %v2019_v31 = vmul.f32 %v2003_v35, %v4815_v44  ;;  %v2249_v20 = vadd.f32 %v2248_v7, %v2247_v3 }
 0x460   :  { %v1941_v41 = vadd.f32 %v1925_v26, %v4856_v22  ;;  %v4889_v12 = vadd.f32 %v4642_v8, %v1875_v13  ;;  %v2255_v13 = vrot.slane %v2254_v6, 1  ;;  %v2160_v27 = vrot.slane %v2159_v55, 4 }
 0x461   :  { %v2016_v54 = vmul.f32 %v2000_v57, %v4764_v62  ;;  %v2136_v59 = vmul.f32 %v4710_v30, %v2015_v9  ;;  %v2018_v18 = vmul.f32 %v2002_v33, %v4773_v14  ;;  %v2135_v4 = vmul.f32 %v4695_v16, %v2014_v15 }
 0x462   :  { %v3515_v52 = vpop.eup %3514  ;;  %v1957_v60 = vmul.f32 0.7978846, %v1941_v41  ;;  %v1894_v24 = vmul.f32 %v4889_v12, %v4889_v12  ;;  %v2138_v50 = vmul.f32 %v4759_v61, %v2017_v63  ;;  %v4925_v38 = vmax.f32 %v2249_v20, 0.0001 }
 0x463   :  { %v4894_v48 = vpop.eup %3516  ;;  %v1988_v29 = vadd.f32 1.0, %v3515_v52  ;;  %v2256_v52 = vadd.f32 %v2255_v13, %v2254_v6  ;;  %v2137_v56 = vmul.f32 %v4726_v43, %v2016_v54  ;;  %v2139_v16 = vmul.f32 %v4658_v19, %v2018_v18 }
 0x464   :  { %3520 = vtanh.f32 %v1957_v60  ;;  %v1910_v34 = vmul.f32 %v1894_v24, %v4889_v12  ;;  %v2311_v0 = vmul.f32 %v4894_v48, %v4867_v32  ;;  %v4915_v37 = vpop.eup %3518  ;;  %v2166_v60 = vadd.f32 %v2136_v59, %v2135_v4 }
 0x465   :  { %3522 = vrcp.f32 %v4903_v51  ;;  %v2004_v44 = vmul.f32 0.5, %v1988_v29  ;;  %v2161_v35 = vadd.f32 %v2160_v27, %v2159_v55  ;;  %v2173_v7 = vadd.f32 %v2138_v50, %v2137_v56 }
 0x466   :  { %v1926_v26 = vmul.f32 0.044715, %v1910_v34  ;;  %v2312_v53 = vsub.f32 1.0, %v2311_v0  ;;  %v4936_v43 = vmax.f32 %v2256_v52, 0.0001  ;;  %v2157_v33 = vrot.slane %v2156_v2, 1 }
 0x467   :  { %v1877_v25 = vpop.f32.mrf.mxu1  ;;  %v2020_v61 = vmul.f32 %v2004_v44, %v4838_v45  ;;  %v4947_v19 = vsel %vm4898_vm10, %v4869_v42, %v2303_v28  ;;  %v2321_v45 = vand.u32 2147483648, %v4867_v32  ;;  %v2167_v29 = vrot.slane %v2166_v60, 4 }
 0x468   :  { %v1942_v41 = vadd.f32 %v1926_v26, %v4889_v12  ;;  %v4913_v39 = vadd.f32 %v4642_v8, %v1877_v25  ;;  %v2140_v8 = vmul.f32 %v4794_v5, %v2019_v31  ;;  %v2326_v5 = vmul.f32 %v4915_v37, %v4884_v1 }
 0x469   :  { %v2313_v15 = vmul.f32 %v4894_v48, %v2312_v53  ;;  %v2162_v26 = vrot.slane %v2161_v35, 2  ;;  %v2174_v0 = vrot.slane %v2173_v7, 4  ;;  %v2158_v31 = vadd.f32 %v2157_v33, %v2156_v2 }
 0x46a   :  { %v3521_v3 = vpop.eup %3520  ;;  %v1958_v62 = vmul.f32 0.7978846, %v1942_v41  ;;  %v1895_v58 = vmul.f32 %v4913_v39, %v4913_v39  ;;  %v2180_v34 = vadd.f32 %v2140_v8, %v2139_v16  ;;  %v2327_v21 = vsub.f32 1.0, %v2326_v5 }
 0x46b   :  { %v1989_v30 = vadd.f32 1.0, %v3521_v3  ;;  %v4933_v6 = vpop.eup %3522  ;;  %vm2316_vm12 = vweird.f32 %v4894_v48  ;;  %v2319_v20 = vand.u32 2147483647, %v4867_v32  ;;  %v2163_v27 = vadd.f32 %v2162_v26, %v2161_v35 }
 0x46c   :  { %3524 = vtanh.f32 %v1958_v62  ;;  %v1911_v14 = vmul.f32 %v1895_v58, %v4913_v39  ;;  %v2341_v42 = vmul.f32 %v4933_v6, %v4903_v51  ;;  %v2181_v28 = vrot.slane %v2180_v34, 4  ;;  %vm4970_vm14 = vmor %vm2315_vm11, %vm2316_vm12 }
 0x46d   :  { %v2005_v24 = vmul.f32 0.5, %v1989_v30  ;;  %3526 = vrcp.f32 %v4925_v38  ;;  %v2314_v54 = vadd.f32 %v4894_v48, %v2313_v15  ;;  %v2175_v41 = vadd.f32 %v2174_v0, %v2173_v7 }
 0x46e   :  { %v1927_v57 = vmul.f32 0.044715, %v1911_v14  ;;  %3528 = vrcp.f32 %v4936_v43  ;;  %v2328_v59 = vmul.f32 %v4915_v37, %v2327_v21  ;;  %v2336_v2 = vand.u32 2147483648, %v4884_v1 }
 0x46f   :  { %v2021_v9 = vmul.f32 %v2005_v24, %v4856_v22  ;;  %v2141_v22 = vmul.f32 %v4810_v47, %v2020_v61  ;;  %v2342_v18 = vsub.f32 1.0, %v2341_v42  ;;  %v2182_v44 = vadd.f32 %v2181_v28, %v2180_v34 }
 0x470   :  { %v1943_v55 = vadd.f32 %v1927_v57, %v4913_v39  ;;  %vm2331_vm15 = vweird.f32 %v4915_v37  ;;  %v2334_v4 = vand.u32 2147483647, %v4884_v1  ;;  %v4981_v8 = vmul.f32 %v4808_v40, %v2158_v31 }
 0x471   :  { %v2142_v63 = vmul.f32 %v4826_v23, %v2021_v9  ;;  %v2168_v23 = vadd.f32 %v2167_v29, %v2166_v60  ;;  %v2322_v30 = vor.u32 1.1754944e-38, %v2321_v45  ;;  %v2164_v56 = vrot.slane %v2163_v27, 1  ;;  %vm4995_vm1 = vmor %vm2330_vm13, %vm2331_vm15 }
 0x472   :  { %v3525_v10 = vpop.eup %3524  ;;  %v1959_v17 = vmul.f32 0.7978846, %v1943_v55  ;;  %vm4983_vm0 = vcmp.eq.f32.partialorder %v2319_v20, 8.507059e+37  ;;  %v2176_v60 = vrot.slane %v2175_v41, 2  ;;  %v2329_v16 = vadd.f32 %v4915_v37, %v2328_v59 }
 0x473   :  { %v2187_v36 = vadd.f32 %v2142_v63, %v2141_v22  ;;  %v4959_v47 = vpop.eup %3526  ;;  %v1990_v25 = vadd.f32 1.0, %v3525_v10  ;;  %v2169_v52 = vrot.slane %v2168_v23, 2  ;;  %v2318_v61 = vsel %vm4970_vm14, %v4894_v48, %v2314_v54 }
 0x474   :  { %3530 = vtanh.f32 %v1959_v17  ;;  %v2356_v50 = vmul.f32 %v4959_v47, %v4925_v38  ;;  %v4978_v58 = vpop.eup %3528  ;;  %v2183_v24 = vrot.slane %v2182_v44, 2  ;;  %v2343_v7 = vmul.f32 %v4933_v6, %v2342_v18 }
 0x475   :  { %v2188_v13 = vrot.slane %v2187_v36, 4  ;;  %v2006_v32 = vmul.f32 0.5, %v1990_v25  ;;  %vm5000_vm2 = vcmp.eq.f32.partialorder %v2334_v4, 8.507059e+37  ;;  %v2337_v57 = vor.u32 1.1754944e-38, %v2336_v2 }
 0x476   :  { %v2357_v9 = vsub.f32 1.0, %v2356_v50  ;;  %v2170_v48 = vadd.f32 %v2169_v52, %v2168_v23  ;;  %v2371_v1 = vmul.f32 %v4978_v58, %v4936_v43  ;;  %v2165_v55 = vadd.f32 %v2164_v56, %v2163_v27 }
 0x477   :  { %v2189_v62 = vadd.f32 %v2188_v13, %v2187_v36  ;;  %v2022_v33 = vmul.f32 %v2006_v32, %v4889_v12  ;;  %v2177_v29 = vadd.f32 %v2176_v60, %v2175_v41  ;;  %v2333_v15 = vsel %vm4995_vm1, %v4915_v37, %v2329_v16 }
 0x478   :  { %vm2345_vm3 = vweird.f32 %v4903_v51  ;;  %v2184_v63 = vadd.f32 %v2183_v24, %v2182_v44  ;;  %v2344_v10 = vadd.f32 %v4933_v6, %v2343_v7  ;;  %vm2346_vm4 = vweird.f32 %v4933_v6 }
 0x479   :  { %v2190_v34 = vrot.slane %v2189_v62, 2  ;;  %v2349_v26 = vand.u32 2147483647, %v4903_v51  ;;  %v2351_v0 = vand.u32 2147483648, %v4903_v51  ;;  %v2358_v21 = vmul.f32 %v4959_v47, %v2357_v9  ;;  %vm5019_vm5 = vmor %vm2345_vm3, %vm2346_vm4 }
 0x47a   :  { %v3531_v53 = vpop.eup %3530  ;;  %v2171_v17 = vrot.slane %v2170_v48, 1  ;;  %v2143_v42 = vmul.f32 %v4840_v11, %v2022_v33  ;;  %v2372_v28 = vsub.f32 1.0, %v2371_v1  ;;  %v2178_v36 = vrot.slane %v2177_v29, 1 }
 0x47b   :  { %v1991_v35 = vadd.f32 1.0, %v3531_v53  ;;  %v2191_v12 = vadd.f32 %v2190_v34, %v2189_v62  ;;  %vm2360_vm6 = vweird.f32 %v4925_v38  ;;  %vm2361_vm7 = vweird.f32 %v4959_v47 }
 0x47c   :  { %v2366_v31 = vand.u32 2147483648, %v4925_v38  ;;  %v5027_v51 = vmul.f32 %v4947_v19, %v2165_v55  ;;  %v2323_v11 = vsel %vm4983_vm0, %v2322_v30, %v2318_v61  ;;  %v2338_v20 = vsel %vm5000_vm2, %v2337_v57, %v2333_v15  ;;  %vm5038_vm8 = vmor %vm2360_vm6, %vm2361_vm7 }
 0x47d   :  { %v2007_v45 = vmul.f32 0.5, %v1991_v35  ;;  %v2192_v13 = vrot.slane %v2191_v12, 1  ;;  %v2359_v25 = vadd.f32 %v4959_v47, %v2358_v21  ;;  %v2364_v27 = vand.u32 2147483647, %v4925_v38 }
 0x47e   :  { %v2172_v54 = vadd.f32 %v2171_v17, %v2170_v48  ;;  %v2348_v19 = vsel %vm5019_vm5, %v4933_v6, %v2344_v10  ;;  %v2373_v2 = vmul.f32 %v4978_v58, %v2372_v28  ;;  %v2179_v18 = vadd.f32 %v2178_v36, %v2177_v29 }
 0x47f   :  { %v2023_v22 = vmul.f32 %v2007_v45, %v4913_v39  ;;  %vm5043_vm9 = vcmp.eq.f32.partialorder %v2349_v26, 8.507059e+37  ;;  %v2352_v3 = vor.u32 1.1754944e-38, %v2351_v0  ;;  %v2367_v4 = vor.u32 1.1754944e-38, %v2366_v31 }
 0x480   :  { %vm2375_vm10 = vweird.f32 %v4936_v43  ;;  %vm2376_vm11 = vweird.f32 %v4978_v58  ;;  %v2193_v6 = vadd.f32 %v2192_v13, %v2191_v12  ;;  %v2363_v62 = vsel %vm5038_vm8, %v4959_v47, %v2359_v25 }
 0x481   :  { %v2144_v37 = vmul.f32 %v4842_v46, %v2023_v22  ;;  %v2185_v46 = vrot.slane %v2184_v63, 1  ;;  %vm2365_vm12 = vcmp.eq.f32.partialorder %v2364_v27, 8.507059e+37  ;;  %v2381_v52 = vand.u32 2147483648, %v4936_v43  ;;  %vm5063_vm13 = vmor %vm2375_vm10, %vm2376_vm11 }
 0x482   :  { %v5053_v30 = vmul.f32 %v2323_v11, %v2172_v54  ;;  %v2374_v53 = vadd.f32 %v4978_v58, %v2373_v2  ;;  %v2379_v56 = vand.u32 2147483647, %v4936_v43  ;;  %v2385_v14 = vmul.f32 %v4874_v49, %v4874_v49 }
 0x483   :  { %v2194_v23 = vadd.f32 %v2144_v37, %v2143_v42  ;;  %v2186_v38 = vadd.f32 %v2185_v46, %v2184_v63  ;;  %v5059_v60 = vmul.f32 %v2338_v20, %v2179_v18  ;;  %v2353_v16 = vsel %vm5043_vm9, %v2352_v3, %v2348_v19 }
 0x484   :  { %vm2401_vm14 = vcmask 1041409   ;;  %v2386_v61 = vmul.f32 %v4981_v8, %v4981_v8  ;;  %v2368_v43 = vsel %vm2365_vm12, %v2367_v4, %v2363_v62  ;;  %v2387_v35 = vmul.f32 %v5027_v51, %v5027_v51 }
 0x485   :  { %v2195_v41 = vrot.slane %v2194_v23, 4  ;;  %v5069_v24 = vmul.f32 %v2353_v16, %v2186_v38  ;;  %v5073_v7 = vmul.f32 %v2368_v43, %v2193_v6  ;;  %v2382_v5 = vor.u32 1.1754944e-38, %v2381_v52 }
 0x486   :  { %vm5244_vm15 = vcmask 1042434   ;;  %v2388_v57 = vmul.f32 %v5053_v30, %v5053_v30  ;;  %v2378_v9 = vsel %vm5063_vm13, %v4978_v58, %v2374_v53  ;;  %vm2380_vm0 = vcmp.eq.f32.partialorder %v2379_v56, 8.507059e+37 }
 0x487   :  { %v2196_v50 = vadd.f32 %v2195_v41, %v2194_v23  ;;  %v2389_v48 = vmul.f32 %v5059_v60, %v5059_v60  ;;  %vm5243_vm1 = vcmask 1043459   ;;  %v2390_v45 = vmul.f32 %v5069_v24, %v5069_v24 }
 0x488   :  { %v2402_v1 = vsel %vm2401_vm14, %v2386_v61, %v2385_v14  ;;  %vm5242_vm2 = vcmask 1044484   ;;  %v2383_v55 = vsel %vm2380_vm0, %v2382_v5, %v2378_v9  ;;  %v2391_v29 = vmul.f32 %v5073_v7, %v5073_v7 }
 0x489   :  { %v2197_v32 = vrot.slane %v2196_v50, 2  ;;  %v2404_v15 = vsel %vm5244_vm15, %v2387_v35, %v2402_v1  ;;  %vm5241_vm3 = vcmask 1045509   ;;  %vm5240_vm4 = vcmask 1046534  }
 0x48a   :  { %v2406_v22 = vsel %vm5243_vm1, %v2388_v57, %v2404_v15  ;;  %vm5239_vm5 = vcmask 1047559  }
 0x48b   :  { %v2198_v40 = vadd.f32 %v2197_v32, %v2196_v50  ;;  %v2408_v63 = vsel %vm5242_vm2, %v2389_v48, %v2406_v22 }
 0x48c   :  { %v2410_v12 = vsel %vm5241_vm3, %v2390_v45, %v2408_v63 }
 0x48d   :  { %v2199_v34 = vrot.slane %v2198_v40, 1  ;;  %v2412_v26 = vsel %vm5240_vm4, %v2391_v29, %v2410_v12 }
 0x48f   :  { %v2200_v33 = vadd.f32 %v2199_v34, %v2198_v40 }
 0x491   :  { %v5088_v58 = vmul.f32 %v2383_v55, %v2200_v33 }
 0x493   :  { %v2392_v10 = vmul.f32 %v5088_v58, %v5088_v58 }
 0x495   :  { %v2414_v0 = vsel %vm5239_vm5, %v2392_v10, %v2412_v26 }
 0x496   :  { %2416 = vadd.xlane.f32.xlu1 %v2414_v0 }
 0x509   :  { %v2417_v21 = vpop.xlane.xlu1 %2416 }
 0x50a   :  { %3532 = vrsqrt.f32 %v2417_v21  ;;  %vm2425_vm6 = vcmp.eq.f32.partialorder %v2417_v21, inf  ;;  %v2428_v11 = vand.u32 2147483648, %v2417_v21  ;;  %vm2427_vm7 = vcmp.eq.f32.partialorder %v2417_v21, 0.0 }
 0x510   :  { %v3533_v17 = vpop.eup %3532 }
 0x511   :  { %v2419_v42 = vmul.f32 %v3533_v17, %v2417_v21 }
 0x513   :  { %v2420_v37 = vmul.f32 %v3533_v17, %v2419_v42 }
 0x515   :  { %v2421_v28 = vmul.f32 0.5, %v2420_v37 }
 0x517   :  { %v2422_v36 = vsub.f32 1.5, %v2421_v28 }
 0x519   :  { %v2423_v39 = vmul.f32 %v3533_v17, %v2422_v36 }
 0x51b   :  { %v2424_v31 = vmul.f32 %v2423_v39, %v2417_v21 }
 0x51d   :  { %v2426_v23 = vsel %vm2425_vm6, %v2417_v21, %v2424_v31 }
 0x51e   :  { %v2429_v46 = vsel %vm2427_vm7, %v2428_v11, %v2426_v23 }
 0x51f   :  { %v2430_v20 = vmax.f32 %v2429_v46, 1e-12 }
 0x521   :  { %v2432_v13 = vrot.slane %v2430_v20, 1  ;;  %v5097_v25 = vrot.slane %v2430_v20, 2  ;;  %v5099_v27 = vrot.slane %v2430_v20, 3  ;;  %3534 = vrcp.f32 %v2430_v20 }
 0x522   :  { %v5101_v54 = vrot.slane %v2430_v20, 4  ;;  %v2458_v41 = vand.u32 2147483648, %v2430_v20  ;;  %v5105_v2 = vrot.slane %v2430_v20, 5  ;;  %v5107_v18 = vrot.slane %v2430_v20, 6 }
 0x523   :  { %3536 = vrcp.f32 %v2432_v13  ;;  %v2471_v19 = vand.u32 2147483647, %v2432_v13  ;;  %v2473_v59 = vand.u32 2147483648, %v2432_v13  ;;  %v5109_v44 = vrot.slane %v2430_v20, 7 }
 0x524   :  { %3538 = vrcp.f32 %v5097_v25  ;;  %v2486_v3 = vand.u32 2147483647, %v5097_v25  ;;  %vm2452_vm8 = vweird.f32 %v2430_v20  ;;  %v2456_v38 = vand.u32 2147483647, %v2430_v20 }
 0x525   :  { %3540 = vrcp.f32 %v5099_v27  ;;  %v2488_v50 = vand.u32 2147483648, %v5097_v25  ;;  %v2459_v52 = vor.u32 1.1754944e-38, %v2458_v41  ;;  %vm2467_vm9 = vweird.f32 %v2432_v13 }
 0x526   :  { %3542 = vrcp.f32 %v5101_v54  ;;  %vm2482_vm10 = vweird.f32 %v5097_v25  ;;  %vm5118_vm11 = vcmp.eq.f32.partialorder %v2471_v19, 8.507059e+37  ;;  %v2474_v14 = vor.u32 1.1754944e-38, %v2473_v59 }
 0x527   :  { %v5112_v4 = vpop.eup %3534  ;;  %v2501_v16 = vand.u32 2147483647, %v5099_v27  ;;  %vm5124_vm12 = vcmp.eq.f32.partialorder %v2486_v3, 8.507059e+37  ;;  %vm2497_vm13 = vweird.f32 %v5099_v27  ;;  %v2503_v43 = vand.u32 2147483648, %v5099_v27 }
 0x528   :  { %v2448_v62 = vmul.f32 %v5112_v4, %v2430_v20  ;;  %3544 = vrcp.f32 %v5105_v2  ;;  %vm2453_vm0 = vweird.f32 %v5112_v4  ;;  %vm5132_vm6 = vcmp.eq.f32.partialorder %v2456_v38, 8.507059e+37 }
 0x529   :  { %v3537_v6 = vpop.eup %3536  ;;  %v2489_v34 = vor.u32 1.1754944e-38, %v2488_v50  ;;  %v2516_v9 = vand.u32 2147483647, %v5101_v54  ;;  %v2518_v29 = vand.u32 2147483648, %v5101_v54  ;;  %3546 = vrcp.f32 %v5107_v18  ;;  %vm5146_vm4 = vmor %vm2452_vm8, %vm2453_vm0 }
 0x52a   :  { %v3539_v32 = vpop.eup %3538  ;;  %v2463_v53 = vmul.f32 %v3537_v6, %v2432_v13  ;;  %v2449_v47 = vsub.f32 1.0, %v2448_v62  ;;  %vm2468_vm7 = vweird.f32 %v3537_v6  ;;  %vm5150_vm3 = vcmp.eq.f32.partialorder %v2501_v16, 8.507059e+37 }
 0x52b   :  { %v2478_v61 = vmul.f32 %v3539_v32, %v5097_v25  ;;  %v3541_v35 = vpop.eup %3540  ;;  %vm2483_vm5 = vweird.f32 %v3539_v32  ;;  %v2504_v21 = vor.u32 1.1754944e-38, %v2503_v43  ;;  %vm2512_vm2 = vweird.f32 %v5101_v54  ;;  %vm2469_vm1 = vmor %vm2467_vm9, %vm2468_vm7 }
 0x52c   :  { %v2464_v57 = vsub.f32 1.0, %v2463_v53  ;;  %v2450_v48 = vmul.f32 %v5112_v4, %v2449_v47  ;;  %v2493_v45 = vmul.f32 %v3541_v35, %v5099_v27  ;;  %v3543_v1 = vpop.eup %3542  ;;  %vm2498_vm15 = vweird.f32 %v3541_v35  ;;  %vm2484_vm0 = vmor %vm2482_vm10, %vm2483_vm5 }
 0x52d   :  { %v2479_v33 = vsub.f32 1.0, %v2478_v61  ;;  %v2508_v10 = vmul.f32 %v3543_v1, %v5101_v54  ;;  %vm5157_vm8 = vcmp.eq.f32.partialorder %v2516_v9, 8.507059e+37  ;;  %v2519_v11 = vor.u32 1.1754944e-38, %v2518_v29 }
 0x52e   :  { %v2465_v55 = vmul.f32 %v3537_v6, %v2464_v57  ;;  %v2451_v15 = vadd.f32 %v5112_v4, %v2450_v48  ;;  %v2494_v63 = vsub.f32 1.0, %v2493_v45  ;;  %v3545_v17 = vpop.eup %3544  ;;  %v2533_v41 = vand.u32 2147483648, %v5105_v2 }
 0x52f   :  { %v2480_v22 = vmul.f32 %v3539_v32, %v2479_v33  ;;  %v2509_v28 = vsub.f32 1.0, %v2508_v10  ;;  %v2523_v23 = vmul.f32 %v3545_v17, %v5105_v2  ;;  %v3547_v19 = vpop.eup %3546  ;;  %vm2528_vm5 = vweird.f32 %v3545_v17 }
 0x530   :  { %v2466_v26 = vadd.f32 %v3537_v6, %v2465_v55  ;;  %v2495_v37 = vmul.f32 %v3541_v35, %v2494_v63  ;;  %v2455_v39 = vsel %vm5146_vm4, %v5112_v4, %v2451_v15  ;;  %vm2513_vm4 = vweird.f32 %v3543_v1 }
 0x531   :  { %v2481_v42 = vadd.f32 %v3539_v32, %v2480_v22  ;;  %v2510_v3 = vmul.f32 %v3543_v1, %v2509_v28  ;;  %v2524_v25 = vsub.f32 1.0, %v2523_v23  ;;  %v2460_v4 = vsel %vm5132_vm6, %v2459_v52, %v2455_v39 }
 0x532   :  { %v2470_v31 = vsel %vm2469_vm1, %v3537_v6, %v2466_v26  ;;  %v2496_v13 = vadd.f32 %v3541_v35, %v2495_v37  ;;  %vm2499_vm1 = vmor %vm2497_vm13, %vm2498_vm15  ;;  %v2538_v50 = vmul.f32 %v3547_v19, %v5107_v18  ;;  %vm2527_vm9 = vweird.f32 %v5105_v2 }
 0x533   :  { %v2475_v46 = vsel %vm5118_vm11, %v2474_v14, %v2470_v31  ;;  %v2485_v20 = vsel %vm2484_vm0, %v3539_v32, %v2481_v42  ;;  %v2511_v32 = vadd.f32 %v3543_v1, %v2510_v3  ;;  %v2525_v53 = vmul.f32 %v3545_v17, %v2524_v25  ;;  %vm2514_vm15 = vmor %vm2512_vm2, %vm2513_vm4 }
 0x534   :  { %v2490_v59 = vsel %vm5124_vm12, %v2489_v34, %v2485_v20  ;;  %v2500_v38 = vsel %vm2499_vm1, %v3541_v35, %v2496_v13  ;;  %v2476_v6 = vmul.f32 %v2475_v46, %v4981_v8  ;;  %v2539_v56 = vsub.f32 1.0, %v2538_v50 }
 0x535   :  { %v2505_v62 = vsel %vm5150_vm3, %v2504_v21, %v2500_v38  ;;  %v2491_v27 = vmul.f32 %v2490_v59, %v5027_v51  ;;  %3548 = vrcp.f32 %v5109_v44  ;;  %v2515_v52 = vsel %vm2514_vm15, %v3543_v1, %v2511_v32  ;;  %vm5190_vm3 = vmor %vm2527_vm9, %vm2528_vm5 }
 0x536   :  { %v2526_v14 = vadd.f32 %v3545_v17, %v2525_v53  ;;  %v2531_v16 = vand.u32 2147483647, %v5105_v2  ;;  %v2534_v8 = vor.u32 1.1754944e-38, %v2533_v41  ;;  %v2461_v47 = vmul.f32 %v2460_v4, %v4874_v49 }
 0x537   :  { %v2506_v61 = vmul.f32 %v2505_v62, %v5053_v30  ;;  %v2540_v54 = vmul.f32 %v3547_v19, %v2539_v56  ;;  %vm2543_vm2 = vweird.f32 %v3547_v19  ;;  %v2520_v40 = vsel %vm5157_vm8, %v2519_v11, %v2515_v52 }
 0x538   :  { %v2530_v43 = vsel %vm5190_vm3, %v3545_v17, %v2526_v14  ;;  %v2548_v2 = vand.u32 2147483648, %v5107_v18  ;;  %v2575_v35 = vrot.slane %v2476_v6, 7  ;;  %vm2542_vm10 = vweird.f32 %v5107_v18 }
 0x539   :  { %v2541_v5 = vadd.f32 %v3547_v19, %v2540_v54  ;;  %v2546_v49 = vand.u32 2147483647, %v5107_v18  ;;  %v2577_v30 = vrot.slane %v2491_v27, 6  ;;  %vm2532_vm11 = vcmp.eq.f32.partialorder %v2531_v16, 8.507059e+37  ;;  %vm2544_vm12 = vmor %vm2542_vm10, %vm2543_vm2 }
 0x53a   :  { %v2576_v57 = vsel %vm2401_vm14, %v2575_v35, %v2461_v47  ;;  %v2521_v9 = vmul.f32 %v2520_v40, %v5059_v60  ;;  %v2535_v48 = vsel %vm2532_vm11, %v2534_v8, %v2530_v43  ;;  %vm5291_vm13 = vcmask 1042434  }
 0x53b   :  { %v3549_v34 = vpop.eup %3548  ;;  %v2545_v33 = vsel %vm2544_vm12, %v3547_v19, %v2541_v5  ;;  %v2578_v45 = vsel %vm5291_vm13, %v2577_v30, %v2576_v57  ;;  %v2549_v1 = vor.u32 1.1754944e-38, %v2548_v2  ;;  %v2579_v29 = vrot.slane %v2506_v61, 5 }
 0x53c   :  { %v2553_v55 = vmul.f32 %v3549_v34, %v5109_v44  ;;  %vm2547_vm6 = vcmp.eq.f32.partialorder %v2546_v49, 8.507059e+37  ;;  %v2536_v15 = vmul.f32 %v2535_v48, %v5069_v24  ;;  %vm5292_vm7 = vcmask 1043459  }
 0x53d   :  { %v2550_v18 = vsel %vm2547_vm6, %v2549_v1, %v2545_v33  ;;  %v2580_v63 = vsel %vm5292_vm7, %v2579_v29, %v2578_v45  ;;  %v2563_v10 = vand.u32 2147483648, %v5109_v44  ;;  %v2581_v12 = vrot.slane %v2521_v9, 4 }
 0x53e   :  { %v2554_v22 = vsub.f32 1.0, %v2553_v55  ;;  %vm2558_vm14 = vweird.f32 %v3549_v34  ;;  %v2561_v60 = vand.u32 2147483647, %v5109_v44  ;;  %v2551_v0 = vmul.f32 %v2550_v18, %v5073_v7 }
 0x53f   :  { %vm5293_vm8 = vcmask 1044484   ;;  %vm2557_vm0 = vweird.f32 %v5109_v44  ;;  %v2583_v42 = vrot.slane %v2536_v15, 3  ;;  %v2564_v24 = vor.u32 1.1754944e-38, %v2563_v10 }
 0x540   :  { %v2555_v26 = vmul.f32 %v3549_v34, %v2554_v22  ;;  %v2582_v21 = vsel %vm5293_vm8, %v2581_v12, %v2580_v63  ;;  %vm2559_vm1 = vmor %vm2557_vm0, %vm2558_vm14  ;;  %vm2562_vm4 = vcmp.eq.f32.partialorder %v2561_v60, 8.507059e+37  ;;  %vm5294_vm5 = vcmask 1045509  }
 0x541   :  { %v2584_v28 = vsel %vm5294_vm5, %v2583_v42, %v2582_v21  ;;  %v2585_v39 = vrot.slane %v2551_v0, 2  ;;  %vm5295_vm15 = vcmask 1046534   ;;  %vm5296_vm9 = vcmask 1047559  }
 0x542   :  { %v2556_v17 = vadd.f32 %v3549_v34, %v2555_v26 }
 0x543   :  { %v2586_v11 = vsel %vm5295_vm15, %v2585_v39, %v2584_v28 }
 0x544   :  { %v2560_v37 = vsel %vm2559_vm1, %v3549_v34, %v2556_v17 }
 0x545   :  { %v2565_v36 = vsel %vm2562_vm4, %v2564_v24, %v2560_v37 }
 0x546   :  { %v2566_v31 = vmul.f32 %v2565_v36, %v5088_v58 }
 0x548   :  { %v2587_v23 = vrot.slane %v2566_v31, 1 }
 0x54a   :  { %v2588_v7 = vsel %vm5296_vm9, %v2587_v23, %v2586_v11 }
 0x54b   :  { %2590 = vst [vmem:[%s5236_s16] sm:$0xff] %v2588_v7 }

</bundles_post_ra>
